<compile_context>
chip_gen: v7x
topology: tpu7x:2x2x1
jax: 0.10.0
libtpu: 0.0.40
codegen_flags: <defaults>
</compile_context>

<pallas_src>
import math

import jax
import jax.numpy as jnp
from jax.experimental import pallas as pl
from jax.experimental.pallas import tpu as pltpu

# ----------------------------- model config (small) ------------------------
BATCH = 2
SEQ = 8
VOCAB = 100
VOCAB_PAD = ((VOCAB + 7) // 8) * 8      # sublane-aligned embedding table rows
HIDDEN = 32
N_HEADS = 4
HEAD_DIM = HIDDEN // N_HEADS
FFN = 4 * HIDDEN
N_LAYERS = 2
LN_EPS = 1e-12
MASK_BIAS = -1e9                        # finite (HF-style) additive mask bias


def _layernorm(x, g, b):
    # Independent sum / sum-of-squares reductions: the two lane reduces are not
    # chained through mean -> center -> var (shortens the XLU critical path).
    n = x.shape[-1]
    s1 = jnp.sum(x, axis=-1, keepdims=True)
    s2 = jnp.sum(x * x, axis=-1, keepdims=True)
    mean = s1 * (1.0 / n)
    var = s2 * (1.0 / n) - mean * mean
    return (x - mean) * jax.lax.rsqrt(var + LN_EPS) * g + b


# ----------------------------- fused Pallas kernel --------------------------
def _distilbert_kernel(
    ids_ref,                                   # SMEM (B, S) int32 (scalar prefetch)
    mask_ref,                                  # VMEM (B, S) int32
    word_emb_ref, pos_emb_ref,                 # (VOCAB_PAD, D) f32, (S, D) f32
    emb_ln_g_ref, emb_ln_b_ref,
    wqkv_ref, bqkv_ref, wo_ref, bo_ref,
    sa_ln_g_ref, sa_ln_b_ref,
    w1_ref, b1_ref, w2_ref, b2_ref,
    out_ln_g_ref, out_ln_b_ref,
    clf_w_ref, clf_b_ref,
    o_ref,
    x_scratch,                                 # VMEM (S, D) f32
):
    S, D = SEQ, HIDDEN
    H, dh = N_HEADS, HEAD_DIM
    b = pl.program_id(0)
    scale = 1.0 / math.sqrt(dh)
    bf16 = jnp.bfloat16

    # ---- embedding gather + positional add + LayerNorm (no XLA glue outside) --
    for s in range(S):                         # S=8, unrolled scalar-indexed gather
        tok = ids_ref[b, s]
        x_scratch[pl.ds(s, 1), :] = word_emb_ref[pl.ds(tok, 1), :]
    x = _layernorm(x_scratch[...] + pos_emb_ref[...],
                   emb_ln_g_ref[...], emb_ln_b_ref[...])          # (S, D) f32

    # ---- attention mask -> additive bias, built in-kernel ----
    mask_row = mask_ref[pl.ds(b, 1), :]                           # (1, S) int32
    bias = jnp.where(mask_row > 0, 0.0, MASK_BIAS)                # (1, S) f32
    bias = bias[None, :, :]                                       # (1, 1, S)

    for l in range(N_LAYERS):                                     # unrolled, L=2
        # -------- multi-head self-attention (head-batched) --------
        qkv = jnp.dot(x.astype(bf16), wqkv_ref[l],
                      preferred_element_type=jnp.float32) + bqkv_ref[l]   # (S, 3D)

        # heads become a leading batch dim: (H, S, dh)
        qh = jnp.stack([qkv[:, h * dh:(h + 1) * dh]
                        for h in range(H)], axis=0) * scale
        kh = jnp.stack([qkv[:, D + h * dh:D + (h + 1) * dh]
                        for h in range(H)], axis=0)
        vh = jnp.stack([qkv[:, 2 * D + h * dh:2 * D + (h + 1) * dh]
                        for h in range(H)], axis=0)

        scores = jax.lax.dot_general(                             # (H, S, S)
            qh.astype(bf16), kh.astype(bf16),
            (((2,), (2,)), ((0,), (0,))),
            preferred_element_type=jnp.float32) + bias
        m = jnp.max(scores, axis=-1, keepdims=True)               # 1 reduce / layer
        p = jnp.exp(scores - m)
        p = p * pl.reciprocal(jnp.sum(p, axis=-1, keepdims=True), approx=True)
        ctx = jax.lax.dot_general(                                # (H, S, dh)
            p.astype(bf16), vh.astype(bf16),
            (((2,), (1,)), ((0,), (0,))),
            preferred_element_type=jnp.float32)

        # reassemble heads on lanes -> ONE (S,D)@(D,D) output projection
        ctx_full = jnp.concatenate([ctx[h] for h in range(H)], axis=-1)   # (S, D)
        attn = jnp.dot(ctx_full.astype(bf16), wo_ref[l],
                       preferred_element_type=jnp.float32) + bo_ref[l]
        x = _layernorm(x + attn, sa_ln_g_ref[l], sa_ln_b_ref[l])

        # -------- feed-forward --------
        h1 = jnp.dot(x.astype(bf16), w1_ref[l],
                     preferred_element_type=jnp.float32) + b1_ref[l]
        # TODO(synk): HF DistilBERT uses exact (erf) GELU; tanh approximation here.
        h1 = 0.5 * h1 * (1.0 + jnp.tanh(0.7978845608028654 *
                                        (h1 + 0.044715 * h1 * h1 * h1)))
        ffn = jnp.dot(h1.astype(bf16), w2_ref[l],
                      preferred_element_type=jnp.float32) + b2_ref[l]
        x = _layernorm(x + ffn, out_ln_g_ref[l], out_ln_b_ref[l])

    # classifier on the [CLS] row; dropout (eval mode) = identity.
    cls = x[0:1, :]                                               # (1, D)
    logit = jnp.sum(cls * clf_w_ref[...], axis=-1, keepdims=True) + clf_b_ref[...]
    o_ref[...] = logit.reshape(1, 1, 1).astype(o_ref.dtype)


# ----------------------------- parameter init ------------------------------
def init_params(key):
    def nrm(key, shape, scale=0.02, dtype=jnp.float32):
        return (scale * jax.random.normal(key, shape)).astype(dtype)

    keys = iter(jax.random.split(key, 16))
    L, D, F = N_LAYERS, HIDDEN, FFN
    bf16 = jnp.bfloat16
    return {
        # embedding tables stay f32 (LayerNorm accuracy); rows >= VOCAB unused.
        "word_emb": nrm(next(keys), (VOCAB_PAD, D)),
        "pos_emb": nrm(next(keys), (SEQ, D)),
        "emb_ln_g": jnp.ones((1, D), jnp.float32),
        "emb_ln_b": jnp.zeros((1, D), jnp.float32),
        # matmul weights stored bf16 (MXU-native); biases / LN params stay f32.
        "wqkv": nrm(next(keys), (L, D, 3 * D), dtype=bf16),
        "bqkv": jnp.zeros((L, 1, 3 * D), jnp.float32),
        "wo": nrm(next(keys), (L, D, D), dtype=bf16),
        "bo": jnp.zeros((L, 1, D), jnp.float32),
        "sa_ln_g": jnp.ones((L, 1, D), jnp.float32),
        "sa_ln_b": jnp.zeros((L, 1, D), jnp.float32),
        "w1": nrm(next(keys), (L, D, F), dtype=bf16),
        "b1": jnp.zeros((L, 1, F), jnp.float32),
        "w2": nrm(next(keys), (L, F, D), dtype=bf16),
        "b2": jnp.zeros((L, 1, D), jnp.float32),
        "out_ln_g": jnp.ones((L, 1, D), jnp.float32),
        "out_ln_b": jnp.zeros((L, 1, D), jnp.float32),
        "clf_w": nrm(next(keys), (1, D)),            # Linear(D, 1) weight row
        "clf_b": jnp.zeros((1, 1), jnp.float32),
    }


# ----------------------------- forward pass ---------------------------------
@jax.jit
def distilbert_w_dropout_forward(params, input_ids, attention_mask):
    B, S = input_ids.shape
    D, F, L = HIDDEN, FFN, N_LAYERS

    kernel_args = (
        input_ids,                        # scalar prefetch -> SMEM
        attention_mask,
        params["word_emb"], params["pos_emb"],
        params["emb_ln_g"], params["emb_ln_b"],
        params["wqkv"], params["bqkv"], params["wo"], params["bo"],
        params["sa_ln_g"], params["sa_ln_b"],
        params["w1"], params["b1"], params["w2"], params["b2"],
        params["out_ln_g"], params["out_ln_b"],
        params["clf_w"], params["clf_b"],
    )

    def resident(shape):                  # constant index map -> DMA'd once
        zeros = (0,) * len(shape)
        return pl.BlockSpec(shape, lambda b, ids: zeros)

    in_specs = [
        resident((B, S)),                                  # attention_mask
        resident((VOCAB_PAD, D)),                          # word_emb
        resident((S, D)),                                  # pos_emb
        resident((1, D)), resident((1, D)),                # emb LN gamma / beta
        resident((L, D, 3 * D)), resident((L, 1, 3 * D)),  # wqkv / bqkv
        resident((L, D, D)), resident((L, 1, D)),          # wo / bo
        resident((L, 1, D)), resident((L, 1, D)),          # sa LN gamma / beta
        resident((L, D, F)), resident((L, 1, F)),          # w1 / b1
        resident((L, F, D)), resident((L, 1, D)),          # w2 / b2
        resident((L, 1, D)), resident((L, 1, D)),          # out LN gamma / beta
        resident((1, D)), resident((1, 1)),                # classifier w / b
    ]

    grid_spec = pltpu.PrefetchScalarGridSpec(
        num_scalar_prefetch=1,
        grid=(B,),
        in_specs=in_specs,
        out_specs=pl.BlockSpec((1, 1, 1), lambda b, ids: (b, 0, 0)),
        scratch_shapes=[pltpu.VMEM((S, D), jnp.float32)],
    )

    # advisory cost hint for XLA's scheduler
    per_layer_flops = (
        2 * S * D * 3 * D                     # fused QKV projection
        + N_HEADS * 4 * S * S * HEAD_DIM      # scores + context
        + 2 * S * D * D                       # output projection
        + 4 * S * D * F                       # FFN
    )
    cost = pl.CostEstimate(
        flops=B * (L * per_layer_flops + 2 * D),
        transcendentals=B * L * (N_HEADS * S * S + S * F),
        bytes_accessed=sum(int(a.size) * a.dtype.itemsize for a in kernel_args)
        + B * 4,
    )

    logits = pl.pallas_call(
        _distilbert_kernel,
        out_shape=jax.ShapeDtypeStruct((B, 1, 1), jnp.float32),
        grid_spec=grid_spec,
        compiler_params=pltpu.CompilerParams(dimension_semantics=("parallel",)),
        cost_estimate=cost,
    )(*kernel_args)

    return logits.reshape(B, 1)


# ----------------------------- main -----------------------------------------
if __name__ == "__main__":
    key = jax.random.PRNGKey(0)
    k_params, k_ids = jax.random.split(key)
    params = init_params(k_params)

    input_ids = jax.random.randint(k_ids, (BATCH, SEQ), 0, VOCAB, dtype=jnp.int32)
    attention_mask = jnp.ones((BATCH, SEQ), dtype=jnp.int32)
    attention_mask = attention_mask.at[1, SEQ - 2:].set(0)   # pad tail of 2nd example

    logits = distilbert_w_dropout_forward(params, input_ids, attention_mask)
    jax.block_until_ready(logits)
    assert logits.shape == (BATCH, 1) and logits.dtype == jnp.float32
    assert bool(jnp.all(jnp.isfinite(logits)))
    print("KERNEL_OK")
</pallas_src>

<mosaic_0001>
module attributes {stable_mosaic.version = 11 : i64} {
  func.func @_distilbert_kernel(%arg0: i32, %arg1: memref<2x8xi32, #tpu.memory_space<smem>>, %arg2: memref<2x8xi32, #tpu.memory_space<vmem>>, %arg3: memref<104x32xf32, #tpu.memory_space<vmem>>, %arg4: memref<8x32xf32, #tpu.memory_space<vmem>>, %arg5: memref<1x32xf32, #tpu.memory_space<vmem>>, %arg6: memref<1x32xf32, #tpu.memory_space<vmem>>, %arg7: memref<2x32x96xbf16, #tpu.memory_space<vmem>>, %arg8: memref<2x1x96xf32, #tpu.memory_space<vmem>>, %arg9: memref<2x32x32xbf16, #tpu.memory_space<vmem>>, %arg10: memref<2x1x32xf32, #tpu.memory_space<vmem>>, %arg11: memref<2x1x32xf32, #tpu.memory_space<vmem>>, %arg12: memref<2x1x32xf32, #tpu.memory_space<vmem>>, %arg13: memref<2x32x128xbf16, #tpu.memory_space<vmem>>, %arg14: memref<2x1x128xf32, #tpu.memory_space<vmem>>, %arg15: memref<2x128x32xbf16, #tpu.memory_space<vmem>>, %arg16: memref<2x1x32xf32, #tpu.memory_space<vmem>>, %arg17: memref<2x1x32xf32, #tpu.memory_space<vmem>>, %arg18: memref<2x1x32xf32, #tpu.memory_space<vmem>>, %arg19: memref<1x32xf32, #tpu.memory_space<vmem>>, %arg20: memref<1x1xf32, #tpu.memory_space<vmem>>, %arg21: memref<1x1x1xf32, #tpu.memory_space<vmem>>, %arg22: memref<8x32xf32, #tpu.memory_space<vmem>>) attributes {dimension_semantics = [#tpu.dimension_semantics<parallel>], iteration_bounds = array<i64: 2>, scalar_prefetch = 1 : i64, scratch_operands = 1 : i64, tpu.core_type = #tpu.core_type<tc>, window_params = [{pipeline_mode = #tpu.pipeline_mode<synchronous>, transform_indices = @transform_0, window_bounds = array<i64: 2, 8>}, {pipeline_mode = #tpu.pipeline_mode<synchronous>, transform_indices = @transform_1, window_bounds = array<i64: 104, 32>}, {pipeline_mode = #tpu.pipeline_mode<synchronous>, transform_indices = @transform_2, window_bounds = array<i64: 8, 32>}, {pipeline_mode = #tpu.pipeline_mode<synchronous>, transform_indices = @transform_3, window_bounds = array<i64: 1, 32>}, {pipeline_mode = #tpu.pipeline_mode<synchronous>, transform_indices = @transform_4, window_bounds = array<i64: 1, 32>}, {pipeline_mode = #tpu.pipeline_mode<synchronous>, transform_indices = @transform_5, window_bounds = array<i64: 2, 32, 96>}, {pipeline_mode = #tpu.pipeline_mode<synchronous>, transform_indices = @transform_6, window_bounds = array<i64: 2, 1, 96>}, {pipeline_mode = #tpu.pipeline_mode<synchronous>, transform_indices = @transform_7, window_bounds = array<i64: 2, 32, 32>}, {pipeline_mode = #tpu.pipeline_mode<synchronous>, transform_indices = @transform_8, window_bounds = array<i64: 2, 1, 32>}, {pipeline_mode = #tpu.pipeline_mode<synchronous>, transform_indices = @transform_9, window_bounds = array<i64: 2, 1, 32>}, {pipeline_mode = #tpu.pipeline_mode<synchronous>, transform_indices = @transform_10, window_bounds = array<i64: 2, 1, 32>}, {pipeline_mode = #tpu.pipeline_mode<synchronous>, transform_indices = @transform_11, window_bounds = array<i64: 2, 32, 128>}, {pipeline_mode = #tpu.pipeline_mode<synchronous>, transform_indices = @transform_12, window_bounds = array<i64: 2, 1, 128>}, {pipeline_mode = #tpu.pipeline_mode<synchronous>, transform_indices = @transform_13, window_bounds = array<i64: 2, 128, 32>}, {pipeline_mode = #tpu.pipeline_mode<synchronous>, transform_indices = @transform_14, window_bounds = array<i64: 2, 1, 32>}, {pipeline_mode = #tpu.pipeline_mode<synchronous>, transform_indices = @transform_15, window_bounds = array<i64: 2, 1, 32>}, {pipeline_mode = #tpu.pipeline_mode<synchronous>, transform_indices = @transform_16, window_bounds = array<i64: 2, 1, 32>}, {pipeline_mode = #tpu.pipeline_mode<synchronous>, transform_indices = @transform_17, window_bounds = array<i64: 1, 32>}, {pipeline_mode = #tpu.pipeline_mode<synchronous>, transform_indices = @transform_18, window_bounds = array<i64: 1, 1>}, {transform_indices = @transform_19, window_bounds = array<i64: 1, 1, 1>}]} {
    %0 = arith.index_cast %arg0 : i32 to index
    %c0 = arith.constant 0 : index
    %1 = memref.load %arg1[%0, %c0] : memref<2x8xi32, #tpu.memory_space<smem>>
    %2 = arith.index_cast %1 : i32 to index
    %c0_0 = arith.constant 0 : index
    %3 = vector.load %arg3[%2, %c0_0] : memref<104x32xf32, #tpu.memory_space<vmem>>, vector<1x32xf32>
    %c0_1 = arith.constant 0 : index
    %c0_2 = arith.constant 0 : index
    %4 = vector.load %arg22[%c0_1, %c0_2] : memref<8x32xf32, #tpu.memory_space<vmem>>, vector<1x32xf32>
    tpu.vector_store %arg22[%c0_1, %c0_2], %3 {strides = array<i32>} : memref<8x32xf32, #tpu.memory_space<vmem>>, vector<1x32xf32>,
    %5 = arith.index_cast %arg0 : i32 to index
    %c1 = arith.constant 1 : index
    %6 = memref.load %arg1[%5, %c1] : memref<2x8xi32, #tpu.memory_space<smem>>
    %7 = arith.index_cast %6 : i32 to index
    %c0_3 = arith.constant 0 : index
    %8 = vector.load %arg3[%7, %c0_3] : memref<104x32xf32, #tpu.memory_space<vmem>>, vector<1x32xf32>
    %c1_4 = arith.constant 1 : index
    %c0_5 = arith.constant 0 : index
    %9 = vector.load %arg22[%c1_4, %c0_5] : memref<8x32xf32, #tpu.memory_space<vmem>>, vector<1x32xf32>
    tpu.vector_store %arg22[%c1_4, %c0_5], %8 {strides = array<i32>} : memref<8x32xf32, #tpu.memory_space<vmem>>, vector<1x32xf32>,
    %10 = arith.index_cast %arg0 : i32 to index
    %c2 = arith.constant 2 : index
    %11 = memref.load %arg1[%10, %c2] : memref<2x8xi32, #tpu.memory_space<smem>>
    %12 = arith.index_cast %11 : i32 to index
    %c0_6 = arith.constant 0 : index
    %13 = vector.load %arg3[%12, %c0_6] : memref<104x32xf32, #tpu.memory_space<vmem>>, vector<1x32xf32>
    %c2_7 = arith.constant 2 : index
    %c0_8 = arith.constant 0 : index
    %14 = vector.load %arg22[%c2_7, %c0_8] : memref<8x32xf32, #tpu.memory_space<vmem>>, vector<1x32xf32>
    tpu.vector_store %arg22[%c2_7, %c0_8], %13 {strides = array<i32>} : memref<8x32xf32, #tpu.memory_space<vmem>>, vector<1x32xf32>,
    %15 = arith.index_cast %arg0 : i32 to index
    %c3 = arith.constant 3 : index
    %16 = memref.load %arg1[%15, %c3] : memref<2x8xi32, #tpu.memory_space<smem>>
    %17 = arith.index_cast %16 : i32 to index
    %c0_9 = arith.constant 0 : index
    %18 = vector.load %arg3[%17, %c0_9] : memref<104x32xf32, #tpu.memory_space<vmem>>, vector<1x32xf32>
    %c3_10 = arith.constant 3 : index
    %c0_11 = arith.constant 0 : index
    %19 = vector.load %arg22[%c3_10, %c0_11] : memref<8x32xf32, #tpu.memory_space<vmem>>, vector<1x32xf32>
    tpu.vector_store %arg22[%c3_10, %c0_11], %18 {strides = array<i32>} : memref<8x32xf32, #tpu.memory_space<vmem>>, vector<1x32xf32>,
    %20 = arith.index_cast %arg0 : i32 to index
    %c4 = arith.constant 4 : index
    %21 = memref.load %arg1[%20, %c4] : memref<2x8xi32, #tpu.memory_space<smem>>
    %22 = arith.index_cast %21 : i32 to index
    %c0_12 = arith.constant 0 : index
    %23 = vector.load %arg3[%22, %c0_12] : memref<104x32xf32, #tpu.memory_space<vmem>>, vector<1x32xf32>
    %c4_13 = arith.constant 4 : index
    %c0_14 = arith.constant 0 : index
    %24 = vector.load %arg22[%c4_13, %c0_14] : memref<8x32xf32, #tpu.memory_space<vmem>>, vector<1x32xf32>
    tpu.vector_store %arg22[%c4_13, %c0_14], %23 {strides = array<i32>} : memref<8x32xf32, #tpu.memory_space<vmem>>, vector<1x32xf32>,
    %25 = arith.index_cast %arg0 : i32 to index
    %c5 = arith.constant 5 : index
    %26 = memref.load %arg1[%25, %c5] : memref<2x8xi32, #tpu.memory_space<smem>>
    %27 = arith.index_cast %26 : i32 to index
    %c0_15 = arith.constant 0 : index
    %28 = vector.load %arg3[%27, %c0_15] : memref<104x32xf32, #tpu.memory_space<vmem>>, vector<1x32xf32>
    %c5_16 = arith.constant 5 : index
    %c0_17 = arith.constant 0 : index
    %29 = vector.load %arg22[%c5_16, %c0_17] : memref<8x32xf32, #tpu.memory_space<vmem>>, vector<1x32xf32>
    tpu.vector_store %arg22[%c5_16, %c0_17], %28 {strides = array<i32>} : memref<8x32xf32, #tpu.memory_space<vmem>>, vector<1x32xf32>,
    %30 = arith.index_cast %arg0 : i32 to index
    %c6 = arith.constant 6 : index
    %31 = memref.load %arg1[%30, %c6] : memref<2x8xi32, #tpu.memory_space<smem>>
    %32 = arith.index_cast %31 : i32 to index
    %c0_18 = arith.constant 0 : index
    %33 = vector.load %arg3[%32, %c0_18] : memref<104x32xf32, #tpu.memory_space<vmem>>, vector<1x32xf32>
    %c6_19 = arith.constant 6 : index
    %c0_20 = arith.constant 0 : index
    %34 = vector.load %arg22[%c6_19, %c0_20] : memref<8x32xf32, #tpu.memory_space<vmem>>, vector<1x32xf32>
    tpu.vector_store %arg22[%c6_19, %c0_20], %33 {strides = array<i32>} : memref<8x32xf32, #tpu.memory_space<vmem>>, vector<1x32xf32>,
    %35 = arith.index_cast %arg0 : i32 to index
    %c7 = arith.constant 7 : index
    %36 = memref.load %arg1[%35, %c7] : memref<2x8xi32, #tpu.memory_space<smem>>
    %37 = arith.index_cast %36 : i32 to index
    %c0_21 = arith.constant 0 : index
    %38 = vector.load %arg3[%37, %c0_21] : memref<104x32xf32, #tpu.memory_space<vmem>>, vector<1x32xf32>
    %c7_22 = arith.constant 7 : index
    %c0_23 = arith.constant 0 : index
    %39 = vector.load %arg22[%c7_22, %c0_23] : memref<8x32xf32, #tpu.memory_space<vmem>>, vector<1x32xf32>
    tpu.vector_store %arg22[%c7_22, %c0_23], %38 {strides = array<i32>} : memref<8x32xf32, #tpu.memory_space<vmem>>, vector<1x32xf32>,
    %c0_24 = arith.constant 0 : index
    %c0_25 = arith.constant 0 : index
    %40 = vector.load %arg22[%c0_24, %c0_25] : memref<8x32xf32, #tpu.memory_space<vmem>>, vector<8x32xf32>
    %c0_26 = arith.constant 0 : index
    %c0_27 = arith.constant 0 : index
    %41 = vector.load %arg4[%c0_26, %c0_27] : memref<8x32xf32, #tpu.memory_space<vmem>>, vector<8x32xf32>
    %42 = arith.addf %40, %41 : vector<8x32xf32>
    %c0_28 = arith.constant 0 : index
    %c0_29 = arith.constant 0 : index
    %43 = vector.load %arg5[%c0_28, %c0_29] : memref<1x32xf32, #tpu.memory_space<vmem>>, vector<1x32xf32>
    %c0_30 = arith.constant 0 : index
    %c0_31 = arith.constant 0 : index
    %44 = vector.load %arg6[%c0_30, %c0_31] : memref<1x32xf32, #tpu.memory_space<vmem>>, vector<1x32xf32>
    %cst = arith.constant dense<0.000000e+00> : vector<8xf32>
    %45 = vector.multi_reduction <add>, %42, %cst [1] : vector<8x32xf32> to vector<8xf32>
    %46 = vector.shape_cast %45 : vector<8xf32> to vector<8x1xf32>
    %47 = arith.mulf %42, %42 : vector<8x32xf32>
    %cst_32 = arith.constant dense<0.000000e+00> : vector<8xf32>
    %48 = vector.multi_reduction <add>, %47, %cst_32 [1] : vector<8x32xf32> to vector<8xf32>
    %49 = vector.shape_cast %48 : vector<8xf32> to vector<8x1xf32>
    %cst_33 = arith.constant 3.125000e-02 : f32
    %50 = vector.broadcast %cst_33 : f32 to vector<8x1xf32>
    %51 = arith.mulf %46, %50 : vector<8x1xf32>
    %cst_34 = arith.constant 3.125000e-02 : f32
    %52 = vector.broadcast %cst_34 : f32 to vector<8x1xf32>
    %53 = arith.mulf %49, %52 : vector<8x1xf32>
    %54 = arith.mulf %51, %51 : vector<8x1xf32>
    %55 = arith.subf %53, %54 : vector<8x1xf32>
    %56 = vector.broadcast %51 : vector<8x1xf32> to vector<8x32xf32>
    %57 = arith.subf %42, %56 : vector<8x32xf32>
    %cst_35 = arith.constant 9.99999996E-13 : f32
    %58 = vector.broadcast %cst_35 : f32 to vector<8x1xf32>
    %59 = arith.addf %55, %58 : vector<8x1xf32>
    %60 = math.rsqrt %59 : vector<8x1xf32>
    %61 = vector.broadcast %60 : vector<8x1xf32> to vector<8x32xf32>
    %62 = arith.mulf %57, %61 : vector<8x32xf32>
    %63 = vector.broadcast %43 : vector<1x32xf32> to vector<8x32xf32>
    %64 = arith.mulf %62, %63 : vector<8x32xf32>
    %65 = vector.broadcast %44 : vector<1x32xf32> to vector<8x32xf32>
    %66 = arith.addf %64, %65 : vector<8x32xf32>
    %67 = arith.index_cast %arg0 : i32 to index
    %c0_36 = arith.constant 0 : index
    %68 = vector.load %arg2[%67, %c0_36] : memref<2x8xi32, #tpu.memory_space<vmem>>, vector<1x8xi32>
    %c0_i32 = arith.constant 0 : i32
    %69 = vector.broadcast %c0_i32 : i32 to vector<1x8xi32>
    %70 = arith.cmpi sgt, %68, %69 : vector<1x8xi32>
    %cst_37 = arith.constant 0.000000e+00 : f32
    %cst_38 = arith.constant -1.000000e+09 : f32
    %71 = vector.broadcast %cst_37 : f32 to vector<1x8xf32>
    %72 = vector.broadcast %cst_38 : f32 to vector<1x8xf32>
    %73 = arith.select %70, %71, %72 : vector<1x8xi1>, vector<1x8xf32>
    %74 = vector.shape_cast %73 : vector<1x8xf32> to vector<1x1x8xf32>
    %75 = arith.truncf %66 : vector<8x32xf32> to vector<8x32xbf16>
    %c0_39 = arith.constant 0 : index
    %c0_40 = arith.constant 0 : index
    %c0_41 = arith.constant 0 : index
    %76 = vector.load %arg7[%c0_39, %c0_40, %c0_41] : memref<2x32x96xbf16, #tpu.memory_space<vmem>>, vector<1x32x96xbf16>
    %77 = vector.shape_cast %76 : vector<1x32x96xbf16> to vector<32x96xbf16>
    %cst_42 = arith.constant dense<0.000000e+00> : vector<8x96xf32>
    %78 = tpu.matmul %75, %77, %cst_42 {dimension_numbers = #tpu.dot_dimension_numbers<[1], [0], [0], [1], [0, 0, 1, 1], [], []>} : vector<8x32xbf16>, vector<32x96xbf16>, vector<8x96xf32> -> vector<8x96xf32>
    %c0_43 = arith.constant 0 : index
    %c0_44 = arith.constant 0 : index
    %c0_45 = arith.constant 0 : index
    %79 = vector.load %arg8[%c0_43, %c0_44, %c0_45] : memref<2x1x96xf32, #tpu.memory_space<vmem>>, vector<1x1x96xf32>
    %80 = vector.shape_cast %79 : vector<1x1x96xf32> to vector<1x96xf32>
    %81 = vector.broadcast %80 : vector<1x96xf32> to vector<8x96xf32>
    %82 = arith.addf %78, %81 : vector<8x96xf32>
    %83 = vector.extract_strided_slice %82 {offsets = [0, 0], sizes = [8, 8], strides = [1, 1]} : vector<8x96xf32> to vector<8x8xf32>
    %84 = vector.extract_strided_slice %82 {offsets = [0, 8], sizes = [8, 8], strides = [1, 1]} : vector<8x96xf32> to vector<8x8xf32>
    %85 = vector.extract_strided_slice %82 {offsets = [0, 16], sizes = [8, 8], strides = [1, 1]} : vector<8x96xf32> to vector<8x8xf32>
    %86 = vector.extract_strided_slice %82 {offsets = [0, 24], sizes = [8, 8], strides = [1, 1]} : vector<8x96xf32> to vector<8x8xf32>
    %87 = vector.shape_cast %83 : vector<8x8xf32> to vector<1x8x8xf32>
    %88 = vector.shape_cast %84 : vector<8x8xf32> to vector<1x8x8xf32>
    %89 = vector.shape_cast %85 : vector<8x8xf32> to vector<1x8x8xf32>
    %90 = vector.shape_cast %86 : vector<8x8xf32> to vector<1x8x8xf32>
    %91 = tpu.concatenate %87, %88, %89, %90 in 0 : vector<1x8x8xf32>, vector<1x8x8xf32>, vector<1x8x8xf32>, vector<1x8x8xf32> -> vector<4x8x8xf32>
    %cst_46 = arith.constant 0.353553385 : f32
    %92 = vector.broadcast %cst_46 : f32 to vector<4x8x8xf32>
    %93 = arith.mulf %91, %92 : vector<4x8x8xf32>
    %94 = vector.extract_strided_slice %82 {offsets = [0, 32], sizes = [8, 8], strides = [1, 1]} : vector<8x96xf32> to vector<8x8xf32>
    %95 = vector.extract_strided_slice %82 {offsets = [0, 40], sizes = [8, 8], strides = [1, 1]} : vector<8x96xf32> to vector<8x8xf32>
    %96 = vector.extract_strided_slice %82 {offsets = [0, 48], sizes = [8, 8], strides = [1, 1]} : vector<8x96xf32> to vector<8x8xf32>
    %97 = vector.extract_strided_slice %82 {offsets = [0, 56], sizes = [8, 8], strides = [1, 1]} : vector<8x96xf32> to vector<8x8xf32>
    %98 = vector.shape_cast %94 : vector<8x8xf32> to vector<1x8x8xf32>
    %99 = vector.shape_cast %95 : vector<8x8xf32> to vector<1x8x8xf32>
    %100 = vector.shape_cast %96 : vector<8x8xf32> to vector<1x8x8xf32>
    %101 = vector.shape_cast %97 : vector<8x8xf32> to vector<1x8x8xf32>
    %102 = tpu.concatenate %98, %99, %100, %101 in 0 : vector<1x8x8xf32>, vector<1x8x8xf32>, vector<1x8x8xf32>, vector<1x8x8xf32> -> vector<4x8x8xf32>
    %103 = vector.extract_strided_slice %82 {offsets = [0, 64], sizes = [8, 8], strides = [1, 1]} : vector<8x96xf32> to vector<8x8xf32>
    %104 = vector.extract_strided_slice %82 {offsets = [0, 72], sizes = [8, 8], strides = [1, 1]} : vector<8x96xf32> to vector<8x8xf32>
    %105 = vector.extract_strided_slice %82 {offsets = [0, 80], sizes = [8, 8], strides = [1, 1]} : vector<8x96xf32> to vector<8x8xf32>
    %106 = vector.extract_strided_slice %82 {offsets = [0, 88], sizes = [8, 8], strides = [1, 1]} : vector<8x96xf32> to vector<8x8xf32>
    %107 = vector.shape_cast %103 : vector<8x8xf32> to vector<1x8x8xf32>
    %108 = vector.shape_cast %104 : vector<8x8xf32> to vector<1x8x8xf32>
    %109 = vector.shape_cast %105 : vector<8x8xf32> to vector<1x8x8xf32>
    %110 = vector.shape_cast %106 : vector<8x8xf32> to vector<1x8x8xf32>
    %111 = tpu.concatenate %107, %108, %109, %110 in 0 : vector<1x8x8xf32>, vector<1x8x8xf32>, vector<1x8x8xf32>, vector<1x8x8xf32> -> vector<4x8x8xf32>
    %112 = arith.truncf %93 : vector<4x8x8xf32> to vector<4x8x8xbf16>
    %113 = arith.truncf %102 : vector<4x8x8xf32> to vector<4x8x8xbf16>
    %cst_47 = arith.constant dense<0.000000e+00> : vector<4x8x8xf32>
    %114 = tpu.matmul %112, %113, %cst_47 {dimension_numbers = #tpu.dot_dimension_numbers<[2], [2], [1], [1], [0, 0, 0, 1, 1, 1], [0], [0]>} : vector<4x8x8xbf16>, vector<4x8x8xbf16>, vector<4x8x8xf32> -> vector<4x8x8xf32>
    %115 = vector.broadcast %74 : vector<1x1x8xf32> to vector<4x8x8xf32>
    %116 = arith.addf %114, %115 : vector<4x8x8xf32>
    %cst_48 = arith.constant dense<0xFF800000> : vector<4x8xf32>
    %117 = vector.multi_reduction <maximumf>, %116, %cst_48 [2] : vector<4x8x8xf32> to vector<4x8xf32>
    %118 = vector.shape_cast %117 : vector<4x8xf32> to vector<4x8x1xf32>
    %119 = vector.broadcast %118 : vector<4x8x1xf32> to vector<4x8x8xf32>
    %120 = arith.subf %116, %119 : vector<4x8x8xf32>
    %121 = math.exp %120 : vector<4x8x8xf32>
    %cst_49 = arith.constant dense<0.000000e+00> : vector<4x8xf32>
    %122 = vector.multi_reduction <add>, %121, %cst_49 [2] : vector<4x8x8xf32> to vector<4x8xf32>
    %123 = vector.shape_cast %122 : vector<4x8xf32> to vector<4x8x1xf32>
    %124 = tpu.reciprocal %123 {approx = true} : vector<4x8x1xf32> -> vector<4x8x1xf32>
    %125 = vector.broadcast %124 : vector<4x8x1xf32> to vector<4x8x8xf32>
    %126 = arith.mulf %121, %125 : vector<4x8x8xf32>
    %127 = arith.truncf %126 : vector<4x8x8xf32> to vector<4x8x8xbf16>
    %128 = arith.truncf %111 : vector<4x8x8xf32> to vector<4x8x8xbf16>
    %cst_50 = arith.constant dense<0.000000e+00> : vector<4x8x8xf32>
    %129 = tpu.matmul %127, %128, %cst_50 {dimension_numbers = #tpu.dot_dimension_numbers<[2], [1], [1], [2], [0, 0, 0, 1, 1, 2], [0], [0]>} : vector<4x8x8xbf16>, vector<4x8x8xbf16>, vector<4x8x8xf32> -> vector<4x8x8xf32>
    %130 = vector.extract_strided_slice %129 {offsets = [0, 0, 0], sizes = [1, 8, 8], strides = [1, 1, 1]} : vector<4x8x8xf32> to vector<1x8x8xf32>
    %131 = vector.shape_cast %130 : vector<1x8x8xf32> to vector<8x8xf32>
    %132 = vector.extract_strided_slice %129 {offsets = [1, 0, 0], sizes = [1, 8, 8], strides = [1, 1, 1]} : vector<4x8x8xf32> to vector<1x8x8xf32>
    %133 = vector.shape_cast %132 : vector<1x8x8xf32> to vector<8x8xf32>
    %134 = vector.extract_strided_slice %129 {offsets = [2, 0, 0], sizes = [1, 8, 8], strides = [1, 1, 1]} : vector<4x8x8xf32> to vector<1x8x8xf32>
    %135 = vector.shape_cast %134 : vector<1x8x8xf32> to vector<8x8xf32>
    %136 = vector.extract_strided_slice %129 {offsets = [3, 0, 0], sizes = [1, 8, 8], strides = [1, 1, 1]} : vector<4x8x8xf32> to vector<1x8x8xf32>
    %137 = vector.shape_cast %136 : vector<1x8x8xf32> to vector<8x8xf32>
    %138 = tpu.concatenate %131, %133, %135, %137 in 1 : vector<8x8xf32>, vector<8x8xf32>, vector<8x8xf32>, vector<8x8xf32> -> vector<8x32xf32>
    %139 = arith.truncf %138 : vector<8x32xf32> to vector<8x32xbf16>
    %c0_51 = arith.constant 0 : index
    %c0_52 = arith.constant 0 : index
    %c0_53 = arith.constant 0 : index
    %140 = vector.load %arg9[%c0_51, %c0_52, %c0_53] : memref<2x32x32xbf16, #tpu.memory_space<vmem>>, vector<1x32x32xbf16>
    %141 = vector.shape_cast %140 : vector<1x32x32xbf16> to vector<32x32xbf16>
    %cst_54 = arith.constant dense<0.000000e+00> : vector<8x32xf32>
    %142 = tpu.matmul %139, %141, %cst_54 {dimension_numbers = #tpu.dot_dimension_numbers<[1], [0], [0], [1], [0, 0, 1, 1], [], []>} : vector<8x32xbf16>, vector<32x32xbf16>, vector<8x32xf32> -> vector<8x32xf32>
    %c0_55 = arith.constant 0 : index
    %c0_56 = arith.constant 0 : index
    %c0_57 = arith.constant 0 : index
    %143 = vector.load %arg10[%c0_55, %c0_56, %c0_57] : memref<2x1x32xf32, #tpu.memory_space<vmem>>, vector<1x1x32xf32>
    %144 = vector.shape_cast %143 : vector<1x1x32xf32> to vector<1x32xf32>
    %145 = vector.broadcast %144 : vector<1x32xf32> to vector<8x32xf32>
    %146 = arith.addf %142, %145 : vector<8x32xf32>
    %147 = arith.addf %66, %146 : vector<8x32xf32>
    %c0_58 = arith.constant 0 : index
    %c0_59 = arith.constant 0 : index
    %c0_60 = arith.constant 0 : index
    %148 = vector.load %arg11[%c0_58, %c0_59, %c0_60] : memref<2x1x32xf32, #tpu.memory_space<vmem>>, vector<1x1x32xf32>
    %149 = vector.shape_cast %148 : vector<1x1x32xf32> to vector<1x32xf32>
    %c0_61 = arith.constant 0 : index
    %c0_62 = arith.constant 0 : index
    %c0_63 = arith.constant 0 : index
    %150 = vector.load %arg12[%c0_61, %c0_62, %c0_63] : memref<2x1x32xf32, #tpu.memory_space<vmem>>, vector<1x1x32xf32>
    %151 = vector.shape_cast %150 : vector<1x1x32xf32> to vector<1x32xf32>
    %cst_64 = arith.constant dense<0.000000e+00> : vector<8xf32>
    %152 = vector.multi_reduction <add>, %147, %cst_64 [1] : vector<8x32xf32> to vector<8xf32>
    %153 = vector.shape_cast %152 : vector<8xf32> to vector<8x1xf32>
    %154 = arith.mulf %147, %147 : vector<8x32xf32>
    %cst_65 = arith.constant dense<0.000000e+00> : vector<8xf32>
    %155 = vector.multi_reduction <add>, %154, %cst_65 [1] : vector<8x32xf32> to vector<8xf32>
    %156 = vector.shape_cast %155 : vector<8xf32> to vector<8x1xf32>
    %cst_66 = arith.constant 3.125000e-02 : f32
    %157 = vector.broadcast %cst_66 : f32 to vector<8x1xf32>
    %158 = arith.mulf %153, %157 : vector<8x1xf32>
    %cst_67 = arith.constant 3.125000e-02 : f32
    %159 = vector.broadcast %cst_67 : f32 to vector<8x1xf32>
    %160 = arith.mulf %156, %159 : vector<8x1xf32>
    %161 = arith.mulf %158, %158 : vector<8x1xf32>
    %162 = arith.subf %160, %161 : vector<8x1xf32>
    %163 = vector.broadcast %158 : vector<8x1xf32> to vector<8x32xf32>
    %164 = arith.subf %147, %163 : vector<8x32xf32>
    %cst_68 = arith.constant 9.99999996E-13 : f32
    %165 = vector.broadcast %cst_68 : f32 to vector<8x1xf32>
    %166 = arith.addf %162, %165 : vector<8x1xf32>
    %167 = math.rsqrt %166 : vector<8x1xf32>
    %168 = vector.broadcast %167 : vector<8x1xf32> to vector<8x32xf32>
    %169 = arith.mulf %164, %168 : vector<8x32xf32>
    %170 = vector.broadcast %149 : vector<1x32xf32> to vector<8x32xf32>
    %171 = arith.mulf %169, %170 : vector<8x32xf32>
    %172 = vector.broadcast %151 : vector<1x32xf32> to vector<8x32xf32>
    %173 = arith.addf %171, %172 : vector<8x32xf32>
    %174 = arith.truncf %173 : vector<8x32xf32> to vector<8x32xbf16>
    %c0_69 = arith.constant 0 : index
    %c0_70 = arith.constant 0 : index
    %c0_71 = arith.constant 0 : index
    %175 = vector.load %arg13[%c0_69, %c0_70, %c0_71] : memref<2x32x128xbf16, #tpu.memory_space<vmem>>, vector<1x32x128xbf16>
    %176 = vector.shape_cast %175 : vector<1x32x128xbf16> to vector<32x128xbf16>
    %cst_72 = arith.constant dense<0.000000e+00> : vector<8x128xf32>
    %177 = tpu.matmul %174, %176, %cst_72 {dimension_numbers = #tpu.dot_dimension_numbers<[1], [0], [0], [1], [0, 0, 1, 1], [], []>} : vector<8x32xbf16>, vector<32x128xbf16>, vector<8x128xf32> -> vector<8x128xf32>
    %c0_73 = arith.constant 0 : index
    %c0_74 = arith.constant 0 : index
    %c0_75 = arith.constant 0 : index
    %178 = vector.load %arg14[%c0_73, %c0_74, %c0_75] : memref<2x1x128xf32, #tpu.memory_space<vmem>>, vector<1x1x128xf32>
    %179 = vector.shape_cast %178 : vector<1x1x128xf32> to vector<1x128xf32>
    %180 = vector.broadcast %179 : vector<1x128xf32> to vector<8x128xf32>
    %181 = arith.addf %177, %180 : vector<8x128xf32>
    %cst_76 = arith.constant 5.000000e-01 : f32
    %182 = vector.broadcast %cst_76 : f32 to vector<8x128xf32>
    %183 = arith.mulf %182, %181 : vector<8x128xf32>
    %cst_77 = arith.constant 4.471500e-02 : f32
    %184 = vector.broadcast %cst_77 : f32 to vector<8x128xf32>
    %185 = arith.mulf %184, %181 : vector<8x128xf32>
    %186 = arith.mulf %185, %181 : vector<8x128xf32>
    %187 = arith.mulf %186, %181 : vector<8x128xf32>
    %188 = arith.addf %181, %187 : vector<8x128xf32>
    %cst_78 = arith.constant 0.797884583 : f32
    %189 = vector.broadcast %cst_78 : f32 to vector<8x128xf32>
    %190 = arith.mulf %189, %188 : vector<8x128xf32>
    %191 = math.tanh %190 : vector<8x128xf32>
    %cst_79 = arith.constant 1.000000e+00 : f32
    %192 = vector.broadcast %cst_79 : f32 to vector<8x128xf32>
    %193 = arith.addf %192, %191 : vector<8x128xf32>
    %194 = arith.mulf %183, %193 : vector<8x128xf32>
    %195 = arith.truncf %194 : vector<8x128xf32> to vector<8x128xbf16>
    %c0_80 = arith.constant 0 : index
    %c0_81 = arith.constant 0 : index
    %c0_82 = arith.constant 0 : index
    %196 = vector.load %arg15[%c0_80, %c0_81, %c0_82] : memref<2x128x32xbf16, #tpu.memory_space<vmem>>, vector<1x128x32xbf16>
    %197 = vector.shape_cast %196 : vector<1x128x32xbf16> to vector<128x32xbf16>
    %cst_83 = arith.constant dense<0.000000e+00> : vector<8x32xf32>
    %198 = tpu.matmul %195, %197, %cst_83 {dimension_numbers = #tpu.dot_dimension_numbers<[1], [0], [0], [1], [0, 0, 1, 1], [], []>} : vector<8x128xbf16>, vector<128x32xbf16>, vector<8x32xf32> -> vector<8x32xf32>
    %c0_84 = arith.constant 0 : index
    %c0_85 = arith.constant 0 : index
    %c0_86 = arith.constant 0 : index
    %199 = vector.load %arg16[%c0_84, %c0_85, %c0_86] : memref<2x1x32xf32, #tpu.memory_space<vmem>>, vector<1x1x32xf32>
    %200 = vector.shape_cast %199 : vector<1x1x32xf32> to vector<1x32xf32>
    %201 = vector.broadcast %200 : vector<1x32xf32> to vector<8x32xf32>
    %202 = arith.addf %198, %201 : vector<8x32xf32>
    %203 = arith.addf %173, %202 : vector<8x32xf32>
    %c0_87 = arith.constant 0 : index
    %c0_88 = arith.constant 0 : index
    %c0_89 = arith.constant 0 : index
    %204 = vector.load %arg17[%c0_87, %c0_88, %c0_89] : memref<2x1x32xf32, #tpu.memory_space<vmem>>, vector<1x1x32xf32>
    %205 = vector.shape_cast %204 : vector<1x1x32xf32> to vector<1x32xf32>
    %c0_90 = arith.constant 0 : index
    %c0_91 = arith.constant 0 : index
    %c0_92 = arith.constant 0 : index
    %206 = vector.load %arg18[%c0_90, %c0_91, %c0_92] : memref<2x1x32xf32, #tpu.memory_space<vmem>>, vector<1x1x32xf32>
    %207 = vector.shape_cast %206 : vector<1x1x32xf32> to vector<1x32xf32>
    %cst_93 = arith.constant dense<0.000000e+00> : vector<8xf32>
    %208 = vector.multi_reduction <add>, %203, %cst_93 [1] : vector<8x32xf32> to vector<8xf32>
    %209 = vector.shape_cast %208 : vector<8xf32> to vector<8x1xf32>
    %210 = arith.mulf %203, %203 : vector<8x32xf32>
    %cst_94 = arith.constant dense<0.000000e+00> : vector<8xf32>
    %211 = vector.multi_reduction <add>, %210, %cst_94 [1] : vector<8x32xf32> to vector<8xf32>
    %212 = vector.shape_cast %211 : vector<8xf32> to vector<8x1xf32>
    %cst_95 = arith.constant 3.125000e-02 : f32
    %213 = vector.broadcast %cst_95 : f32 to vector<8x1xf32>
    %214 = arith.mulf %209, %213 : vector<8x1xf32>
    %cst_96 = arith.constant 3.125000e-02 : f32
    %215 = vector.broadcast %cst_96 : f32 to vector<8x1xf32>
    %216 = arith.mulf %212, %215 : vector<8x1xf32>
    %217 = arith.mulf %214, %214 : vector<8x1xf32>
    %218 = arith.subf %216, %217 : vector<8x1xf32>
    %219 = vector.broadcast %214 : vector<8x1xf32> to vector<8x32xf32>
    %220 = arith.subf %203, %219 : vector<8x32xf32>
    %cst_97 = arith.constant 9.99999996E-13 : f32
    %221 = vector.broadcast %cst_97 : f32 to vector<8x1xf32>
    %222 = arith.addf %218, %221 : vector<8x1xf32>
    %223 = math.rsqrt %222 : vector<8x1xf32>
    %224 = vector.broadcast %223 : vector<8x1xf32> to vector<8x32xf32>
    %225 = arith.mulf %220, %224 : vector<8x32xf32>
    %226 = vector.broadcast %205 : vector<1x32xf32> to vector<8x32xf32>
    %227 = arith.mulf %225, %226 : vector<8x32xf32>
    %228 = vector.broadcast %207 : vector<1x32xf32> to vector<8x32xf32>
    %229 = arith.addf %227, %228 : vector<8x32xf32>
    %230 = arith.truncf %229 : vector<8x32xf32> to vector<8x32xbf16>
    %c1_98 = arith.constant 1 : index
    %c0_99 = arith.constant 0 : index
    %c0_100 = arith.constant 0 : index
    %231 = vector.load %arg7[%c1_98, %c0_99, %c0_100] : memref<2x32x96xbf16, #tpu.memory_space<vmem>>, vector<1x32x96xbf16>
    %232 = vector.shape_cast %231 : vector<1x32x96xbf16> to vector<32x96xbf16>
    %cst_101 = arith.constant dense<0.000000e+00> : vector<8x96xf32>
    %233 = tpu.matmul %230, %232, %cst_101 {dimension_numbers = #tpu.dot_dimension_numbers<[1], [0], [0], [1], [0, 0, 1, 1], [], []>} : vector<8x32xbf16>, vector<32x96xbf16>, vector<8x96xf32> -> vector<8x96xf32>
    %c1_102 = arith.constant 1 : index
    %c0_103 = arith.constant 0 : index
    %c0_104 = arith.constant 0 : index
    %234 = vector.load %arg8[%c1_102, %c0_103, %c0_104] : memref<2x1x96xf32, #tpu.memory_space<vmem>>, vector<1x1x96xf32>
    %235 = vector.shape_cast %234 : vector<1x1x96xf32> to vector<1x96xf32>
    %236 = vector.broadcast %235 : vector<1x96xf32> to vector<8x96xf32>
    %237 = arith.addf %233, %236 : vector<8x96xf32>
    %238 = vector.extract_strided_slice %237 {offsets = [0, 0], sizes = [8, 8], strides = [1, 1]} : vector<8x96xf32> to vector<8x8xf32>
    %239 = vector.extract_strided_slice %237 {offsets = [0, 8], sizes = [8, 8], strides = [1, 1]} : vector<8x96xf32> to vector<8x8xf32>
    %240 = vector.extract_strided_slice %237 {offsets = [0, 16], sizes = [8, 8], strides = [1, 1]} : vector<8x96xf32> to vector<8x8xf32>
    %241 = vector.extract_strided_slice %237 {offsets = [0, 24], sizes = [8, 8], strides = [1, 1]} : vector<8x96xf32> to vector<8x8xf32>
    %242 = vector.shape_cast %238 : vector<8x8xf32> to vector<1x8x8xf32>
    %243 = vector.shape_cast %239 : vector<8x8xf32> to vector<1x8x8xf32>
    %244 = vector.shape_cast %240 : vector<8x8xf32> to vector<1x8x8xf32>
    %245 = vector.shape_cast %241 : vector<8x8xf32> to vector<1x8x8xf32>
    %246 = tpu.concatenate %242, %243, %244, %245 in 0 : vector<1x8x8xf32>, vector<1x8x8xf32>, vector<1x8x8xf32>, vector<1x8x8xf32> -> vector<4x8x8xf32>
    %cst_105 = arith.constant 0.353553385 : f32
    %247 = vector.broadcast %cst_105 : f32 to vector<4x8x8xf32>
    %248 = arith.mulf %246, %247 : vector<4x8x8xf32>
    %249 = vector.extract_strided_slice %237 {offsets = [0, 32], sizes = [8, 8], strides = [1, 1]} : vector<8x96xf32> to vector<8x8xf32>
    %250 = vector.extract_strided_slice %237 {offsets = [0, 40], sizes = [8, 8], strides = [1, 1]} : vector<8x96xf32> to vector<8x8xf32>
    %251 = vector.extract_strided_slice %237 {offsets = [0, 48], sizes = [8, 8], strides = [1, 1]} : vector<8x96xf32> to vector<8x8xf32>
    %252 = vector.extract_strided_slice %237 {offsets = [0, 56], sizes = [8, 8], strides = [1, 1]} : vector<8x96xf32> to vector<8x8xf32>
    %253 = vector.shape_cast %249 : vector<8x8xf32> to vector<1x8x8xf32>
    %254 = vector.shape_cast %250 : vector<8x8xf32> to vector<1x8x8xf32>
    %255 = vector.shape_cast %251 : vector<8x8xf32> to vector<1x8x8xf32>
    %256 = vector.shape_cast %252 : vector<8x8xf32> to vector<1x8x8xf32>
    %257 = tpu.concatenate %253, %254, %255, %256 in 0 : vector<1x8x8xf32>, vector<1x8x8xf32>, vector<1x8x8xf32>, vector<1x8x8xf32> -> vector<4x8x8xf32>
    %258 = vector.extract_strided_slice %237 {offsets = [0, 64], sizes = [8, 8], strides = [1, 1]} : vector<8x96xf32> to vector<8x8xf32>
    %259 = vector.extract_strided_slice %237 {offsets = [0, 72], sizes = [8, 8], strides = [1, 1]} : vector<8x96xf32> to vector<8x8xf32>
    %260 = vector.extract_strided_slice %237 {offsets = [0, 80], sizes = [8, 8], strides = [1, 1]} : vector<8x96xf32> to vector<8x8xf32>
    %261 = vector.extract_strided_slice %237 {offsets = [0, 88], sizes = [8, 8], strides = [1, 1]} : vector<8x96xf32> to vector<8x8xf32>
    %262 = vector.shape_cast %258 : vector<8x8xf32> to vector<1x8x8xf32>
    %263 = vector.shape_cast %259 : vector<8x8xf32> to vector<1x8x8xf32>
    %264 = vector.shape_cast %260 : vector<8x8xf32> to vector<1x8x8xf32>
    %265 = vector.shape_cast %261 : vector<8x8xf32> to vector<1x8x8xf32>
    %266 = tpu.concatenate %262, %263, %264, %265 in 0 : vector<1x8x8xf32>, vector<1x8x8xf32>, vector<1x8x8xf32>, vector<1x8x8xf32> -> vector<4x8x8xf32>
    %267 = arith.truncf %248 : vector<4x8x8xf32> to vector<4x8x8xbf16>
    %268 = arith.truncf %257 : vector<4x8x8xf32> to vector<4x8x8xbf16>
    %cst_106 = arith.constant dense<0.000000e+00> : vector<4x8x8xf32>
    %269 = tpu.matmul %267, %268, %cst_106 {dimension_numbers = #tpu.dot_dimension_numbers<[2], [2], [1], [1], [0, 0, 0, 1, 1, 1], [0], [0]>} : vector<4x8x8xbf16>, vector<4x8x8xbf16>, vector<4x8x8xf32> -> vector<4x8x8xf32>
    %270 = vector.broadcast %74 : vector<1x1x8xf32> to vector<4x8x8xf32>
    %271 = arith.addf %269, %270 : vector<4x8x8xf32>
    %cst_107 = arith.constant dense<0xFF800000> : vector<4x8xf32>
    %272 = vector.multi_reduction <maximumf>, %271, %cst_107 [2] : vector<4x8x8xf32> to vector<4x8xf32>
    %273 = vector.shape_cast %272 : vector<4x8xf32> to vector<4x8x1xf32>
    %274 = vector.broadcast %273 : vector<4x8x1xf32> to vector<4x8x8xf32>
    %275 = arith.subf %271, %274 : vector<4x8x8xf32>
    %276 = math.exp %275 : vector<4x8x8xf32>
    %cst_108 = arith.constant dense<0.000000e+00> : vector<4x8xf32>
    %277 = vector.multi_reduction <add>, %276, %cst_108 [2] : vector<4x8x8xf32> to vector<4x8xf32>
    %278 = vector.shape_cast %277 : vector<4x8xf32> to vector<4x8x1xf32>
    %279 = tpu.reciprocal %278 {approx = true} : vector<4x8x1xf32> -> vector<4x8x1xf32>
    %280 = vector.broadcast %279 : vector<4x8x1xf32> to vector<4x8x8xf32>
    %281 = arith.mulf %276, %280 : vector<4x8x8xf32>
    %282 = arith.truncf %281 : vector<4x8x8xf32> to vector<4x8x8xbf16>
    %283 = arith.truncf %266 : vector<4x8x8xf32> to vector<4x8x8xbf16>
    %cst_109 = arith.constant dense<0.000000e+00> : vector<4x8x8xf32>
    %284 = tpu.matmul %282, %283, %cst_109 {dimension_numbers = #tpu.dot_dimension_numbers<[2], [1], [1], [2], [0, 0, 0, 1, 1, 2], [0], [0]>} : vector<4x8x8xbf16>, vector<4x8x8xbf16>, vector<4x8x8xf32> -> vector<4x8x8xf32>
    %285 = vector.extract_strided_slice %284 {offsets = [0, 0, 0], sizes = [1, 8, 8], strides = [1, 1, 1]} : vector<4x8x8xf32> to vector<1x8x8xf32>
    %286 = vector.shape_cast %285 : vector<1x8x8xf32> to vector<8x8xf32>
    %287 = vector.extract_strided_slice %284 {offsets = [1, 0, 0], sizes = [1, 8, 8], strides = [1, 1, 1]} : vector<4x8x8xf32> to vector<1x8x8xf32>
    %288 = vector.shape_cast %287 : vector<1x8x8xf32> to vector<8x8xf32>
    %289 = vector.extract_strided_slice %284 {offsets = [2, 0, 0], sizes = [1, 8, 8], strides = [1, 1, 1]} : vector<4x8x8xf32> to vector<1x8x8xf32>
    %290 = vector.shape_cast %289 : vector<1x8x8xf32> to vector<8x8xf32>
    %291 = vector.extract_strided_slice %284 {offsets = [3, 0, 0], sizes = [1, 8, 8], strides = [1, 1, 1]} : vector<4x8x8xf32> to vector<1x8x8xf32>
    %292 = vector.shape_cast %291 : vector<1x8x8xf32> to vector<8x8xf32>
    %293 = tpu.concatenate %286, %288, %290, %292 in 1 : vector<8x8xf32>, vector<8x8xf32>, vector<8x8xf32>, vector<8x8xf32> -> vector<8x32xf32>
    %294 = arith.truncf %293 : vector<8x32xf32> to vector<8x32xbf16>
    %c1_110 = arith.constant 1 : index
    %c0_111 = arith.constant 0 : index
    %c0_112 = arith.constant 0 : index
    %295 = vector.load %arg9[%c1_110, %c0_111, %c0_112] : memref<2x32x32xbf16, #tpu.memory_space<vmem>>, vector<1x32x32xbf16>
    %296 = vector.shape_cast %295 : vector<1x32x32xbf16> to vector<32x32xbf16>
    %cst_113 = arith.constant dense<0.000000e+00> : vector<8x32xf32>
    %297 = tpu.matmul %294, %296, %cst_113 {dimension_numbers = #tpu.dot_dimension_numbers<[1], [0], [0], [1], [0, 0, 1, 1], [], []>} : vector<8x32xbf16>, vector<32x32xbf16>, vector<8x32xf32> -> vector<8x32xf32>
    %c1_114 = arith.constant 1 : index
    %c0_115 = arith.constant 0 : index
    %c0_116 = arith.constant 0 : index
    %298 = vector.load %arg10[%c1_114, %c0_115, %c0_116] : memref<2x1x32xf32, #tpu.memory_space<vmem>>, vector<1x1x32xf32>
    %299 = vector.shape_cast %298 : vector<1x1x32xf32> to vector<1x32xf32>
    %300 = vector.broadcast %299 : vector<1x32xf32> to vector<8x32xf32>
    %301 = arith.addf %297, %300 : vector<8x32xf32>
    %302 = arith.addf %229, %301 : vector<8x32xf32>
    %c1_117 = arith.constant 1 : index
    %c0_118 = arith.constant 0 : index
    %c0_119 = arith.constant 0 : index
    %303 = vector.load %arg11[%c1_117, %c0_118, %c0_119] : memref<2x1x32xf32, #tpu.memory_space<vmem>>, vector<1x1x32xf32>
    %304 = vector.shape_cast %303 : vector<1x1x32xf32> to vector<1x32xf32>
    %c1_120 = arith.constant 1 : index
    %c0_121 = arith.constant 0 : index
    %c0_122 = arith.constant 0 : index
    %305 = vector.load %arg12[%c1_120, %c0_121, %c0_122] : memref<2x1x32xf32, #tpu.memory_space<vmem>>, vector<1x1x32xf32>
    %306 = vector.shape_cast %305 : vector<1x1x32xf32> to vector<1x32xf32>
    %cst_123 = arith.constant dense<0.000000e+00> : vector<8xf32>
    %307 = vector.multi_reduction <add>, %302, %cst_123 [1] : vector<8x32xf32> to vector<8xf32>
    %308 = vector.shape_cast %307 : vector<8xf32> to vector<8x1xf32>
    %309 = arith.mulf %302, %302 : vector<8x32xf32>
    %cst_124 = arith.constant dense<0.000000e+00> : vector<8xf32>
    %310 = vector.multi_reduction <add>, %309, %cst_124 [1] : vector<8x32xf32> to vector<8xf32>
    %311 = vector.shape_cast %310 : vector<8xf32> to vector<8x1xf32>
    %cst_125 = arith.constant 3.125000e-02 : f32
    %312 = vector.broadcast %cst_125 : f32 to vector<8x1xf32>
    %313 = arith.mulf %308, %312 : vector<8x1xf32>
    %cst_126 = arith.constant 3.125000e-02 : f32
    %314 = vector.broadcast %cst_126 : f32 to vector<8x1xf32>
    %315 = arith.mulf %311, %314 : vector<8x1xf32>
    %316 = arith.mulf %313, %313 : vector<8x1xf32>
    %317 = arith.subf %315, %316 : vector<8x1xf32>
    %318 = vector.broadcast %313 : vector<8x1xf32> to vector<8x32xf32>
    %319 = arith.subf %302, %318 : vector<8x32xf32>
    %cst_127 = arith.constant 9.99999996E-13 : f32
    %320 = vector.broadcast %cst_127 : f32 to vector<8x1xf32>
    %321 = arith.addf %317, %320 : vector<8x1xf32>
    %322 = math.rsqrt %321 : vector<8x1xf32>
    %323 = vector.broadcast %322 : vector<8x1xf32> to vector<8x32xf32>
    %324 = arith.mulf %319, %323 : vector<8x32xf32>
    %325 = vector.broadcast %304 : vector<1x32xf32> to vector<8x32xf32>
    %326 = arith.mulf %324, %325 : vector<8x32xf32>
    %327 = vector.broadcast %306 : vector<1x32xf32> to vector<8x32xf32>
    %328 = arith.addf %326, %327 : vector<8x32xf32>
    %329 = arith.truncf %328 : vector<8x32xf32> to vector<8x32xbf16>
    %c1_128 = arith.constant 1 : index
    %c0_129 = arith.constant 0 : index
    %c0_130 = arith.constant 0 : index
    %330 = vector.load %arg13[%c1_128, %c0_129, %c0_130] : memref<2x32x128xbf16, #tpu.memory_space<vmem>>, vector<1x32x128xbf16>
    %331 = vector.shape_cast %330 : vector<1x32x128xbf16> to vector<32x128xbf16>
    %cst_131 = arith.constant dense<0.000000e+00> : vector<8x128xf32>
    %332 = tpu.matmul %329, %331, %cst_131 {dimension_numbers = #tpu.dot_dimension_numbers<[1], [0], [0], [1], [0, 0, 1, 1], [], []>} : vector<8x32xbf16>, vector<32x128xbf16>, vector<8x128xf32> -> vector<8x128xf32>
    %c1_132 = arith.constant 1 : index
    %c0_133 = arith.constant 0 : index
    %c0_134 = arith.constant 0 : index
    %333 = vector.load %arg14[%c1_132, %c0_133, %c0_134] : memref<2x1x128xf32, #tpu.memory_space<vmem>>, vector<1x1x128xf32>
    %334 = vector.shape_cast %333 : vector<1x1x128xf32> to vector<1x128xf32>
    %335 = vector.broadcast %334 : vector<1x128xf32> to vector<8x128xf32>
    %336 = arith.addf %332, %335 : vector<8x128xf32>
    %cst_135 = arith.constant 5.000000e-01 : f32
    %337 = vector.broadcast %cst_135 : f32 to vector<8x128xf32>
    %338 = arith.mulf %337, %336 : vector<8x128xf32>
    %cst_136 = arith.constant 4.471500e-02 : f32
    %339 = vector.broadcast %cst_136 : f32 to vector<8x128xf32>
    %340 = arith.mulf %339, %336 : vector<8x128xf32>
    %341 = arith.mulf %340, %336 : vector<8x128xf32>
    %342 = arith.mulf %341, %336 : vector<8x128xf32>
    %343 = arith.addf %336, %342 : vector<8x128xf32>
    %cst_137 = arith.constant 0.797884583 : f32
    %344 = vector.broadcast %cst_137 : f32 to vector<8x128xf32>
    %345 = arith.mulf %344, %343 : vector<8x128xf32>
    %346 = math.tanh %345 : vector<8x128xf32>
    %cst_138 = arith.constant 1.000000e+00 : f32
    %347 = vector.broadcast %cst_138 : f32 to vector<8x128xf32>
    %348 = arith.addf %347, %346 : vector<8x128xf32>
    %349 = arith.mulf %338, %348 : vector<8x128xf32>
    %350 = arith.truncf %349 : vector<8x128xf32> to vector<8x128xbf16>
    %c1_139 = arith.constant 1 : index
    %c0_140 = arith.constant 0 : index
    %c0_141 = arith.constant 0 : index
    %351 = vector.load %arg15[%c1_139, %c0_140, %c0_141] : memref<2x128x32xbf16, #tpu.memory_space<vmem>>, vector<1x128x32xbf16>
    %352 = vector.shape_cast %351 : vector<1x128x32xbf16> to vector<128x32xbf16>
    %cst_142 = arith.constant dense<0.000000e+00> : vector<8x32xf32>
    %353 = tpu.matmul %350, %352, %cst_142 {dimension_numbers = #tpu.dot_dimension_numbers<[1], [0], [0], [1], [0, 0, 1, 1], [], []>} : vector<8x128xbf16>, vector<128x32xbf16>, vector<8x32xf32> -> vector<8x32xf32>
    %c1_143 = arith.constant 1 : index
    %c0_144 = arith.constant 0 : index
    %c0_145 = arith.constant 0 : index
    %354 = vector.load %arg16[%c1_143, %c0_144, %c0_145] : memref<2x1x32xf32, #tpu.memory_space<vmem>>, vector<1x1x32xf32>
    %355 = vector.shape_cast %354 : vector<1x1x32xf32> to vector<1x32xf32>
    %356 = vector.broadcast %355 : vector<1x32xf32> to vector<8x32xf32>
    %357 = arith.addf %353, %356 : vector<8x32xf32>
    %358 = arith.addf %328, %357 : vector<8x32xf32>
    %c1_146 = arith.constant 1 : index
    %c0_147 = arith.constant 0 : index
    %c0_148 = arith.constant 0 : index
    %359 = vector.load %arg17[%c1_146, %c0_147, %c0_148] : memref<2x1x32xf32, #tpu.memory_space<vmem>>, vector<1x1x32xf32>
    %360 = vector.shape_cast %359 : vector<1x1x32xf32> to vector<1x32xf32>
    %c1_149 = arith.constant 1 : index
    %c0_150 = arith.constant 0 : index
    %c0_151 = arith.constant 0 : index
    %361 = vector.load %arg18[%c1_149, %c0_150, %c0_151] : memref<2x1x32xf32, #tpu.memory_space<vmem>>, vector<1x1x32xf32>
    %362 = vector.shape_cast %361 : vector<1x1x32xf32> to vector<1x32xf32>
    %cst_152 = arith.constant dense<0.000000e+00> : vector<8xf32>
    %363 = vector.multi_reduction <add>, %358, %cst_152 [1] : vector<8x32xf32> to vector<8xf32>
    %364 = vector.shape_cast %363 : vector<8xf32> to vector<8x1xf32>
    %365 = arith.mulf %358, %358 : vector<8x32xf32>
    %cst_153 = arith.constant dense<0.000000e+00> : vector<8xf32>
    %366 = vector.multi_reduction <add>, %365, %cst_153 [1] : vector<8x32xf32> to vector<8xf32>
    %367 = vector.shape_cast %366 : vector<8xf32> to vector<8x1xf32>
    %cst_154 = arith.constant 3.125000e-02 : f32
    %368 = vector.broadcast %cst_154 : f32 to vector<8x1xf32>
    %369 = arith.mulf %364, %368 : vector<8x1xf32>
    %cst_155 = arith.constant 3.125000e-02 : f32
    %370 = vector.broadcast %cst_155 : f32 to vector<8x1xf32>
    %371 = arith.mulf %367, %370 : vector<8x1xf32>
    %372 = arith.mulf %369, %369 : vector<8x1xf32>
    %373 = arith.subf %371, %372 : vector<8x1xf32>
    %374 = vector.broadcast %369 : vector<8x1xf32> to vector<8x32xf32>
    %375 = arith.subf %358, %374 : vector<8x32xf32>
    %cst_156 = arith.constant 9.99999996E-13 : f32
    %376 = vector.broadcast %cst_156 : f32 to vector<8x1xf32>
    %377 = arith.addf %373, %376 : vector<8x1xf32>
    %378 = math.rsqrt %377 : vector<8x1xf32>
    %379 = vector.broadcast %378 : vector<8x1xf32> to vector<8x32xf32>
    %380 = arith.mulf %375, %379 : vector<8x32xf32>
    %381 = vector.broadcast %360 : vector<1x32xf32> to vector<8x32xf32>
    %382 = arith.mulf %380, %381 : vector<8x32xf32>
    %383 = vector.broadcast %362 : vector<1x32xf32> to vector<8x32xf32>
    %384 = arith.addf %382, %383 : vector<8x32xf32>
    %385 = vector.extract_strided_slice %384 {offsets = [0, 0], sizes = [1, 32], strides = [1, 1]} : vector<8x32xf32> to vector<1x32xf32>
    %c0_157 = arith.constant 0 : index
    %c0_158 = arith.constant 0 : index
    %386 = vector.load %arg19[%c0_157, %c0_158] : memref<1x32xf32, #tpu.memory_space<vmem>>, vector<1x32xf32>
    %387 = arith.mulf %385, %386 : vector<1x32xf32>
    %cst_159 = arith.constant dense<0.000000e+00> : vector<1xf32>
    %388 = vector.multi_reduction <add>, %387, %cst_159 [1] : vector<1x32xf32> to vector<1xf32>
    %389 = vector.shape_cast %388 : vector<1xf32> to vector<1x1xf32>
    %c0_160 = arith.constant 0 : index
    %c0_161 = arith.constant 0 : index
    %390 = vector.load %arg20[%c0_160, %c0_161] : memref<1x1xf32, #tpu.memory_space<vmem>>, vector<1x1xf32>
    %391 = arith.addf %389, %390 : vector<1x1xf32>
    %392 = vector.shape_cast %391 : vector<1x1xf32> to vector<1x1x1xf32>
    %c0_162 = arith.constant 0 : index
    %c0_163 = arith.constant 0 : index
    %c0_164 = arith.constant 0 : index
    %393 = vector.load %arg21[%c0_162, %c0_163, %c0_164] : memref<1x1x1xf32, #tpu.memory_space<vmem>>, vector<1x1x1xf32>
    tpu.vector_store %arg21[%c0_162, %c0_163, %c0_164], %392 {strides = array<i32>} : memref<1x1x1xf32, #tpu.memory_space<vmem>>, vector<1x1x1xf32>,
    return
  }
  func.func @transform_0(%arg0: i32, %arg1: memref<2x8xi32, #tpu.memory_space<smem>>) -> (i32, i32) {
    %c0_i32 = arith.constant 0 : i32
    %c0_i32_0 = arith.constant 0 : i32
    %c0_i32_1 = arith.constant 0 : i32
    return %c0_i32, %c0_i32_0 : i32, i32
  }
  func.func @transform_1(%arg0: i32, %arg1: memref<2x8xi32, #tpu.memory_space<smem>>) -> (i32, i32) {
    %c0_i32 = arith.constant 0 : i32
    %c0_i32_0 = arith.constant 0 : i32
    %c0_i32_1 = arith.constant 0 : i32
    return %c0_i32, %c0_i32_0 : i32, i32
  }
  func.func @transform_2(%arg0: i32, %arg1: memref<2x8xi32, #tpu.memory_space<smem>>) -> (i32, i32) {
    %c0_i32 = arith.constant 0 : i32
    %c0_i32_0 = arith.constant 0 : i32
    %c0_i32_1 = arith.constant 0 : i32
    return %c0_i32, %c0_i32_0 : i32, i32
  }
  func.func @transform_3(%arg0: i32, %arg1: memref<2x8xi32, #tpu.memory_space<smem>>) -> (i32, i32) {
    %c0_i32 = arith.constant 0 : i32
    %c0_i32_0 = arith.constant 0 : i32
    %c0_i32_1 = arith.constant 0 : i32
    return %c0_i32, %c0_i32_0 : i32, i32
  }
  func.func @transform_4(%arg0: i32, %arg1: memref<2x8xi32, #tpu.memory_space<smem>>) -> (i32, i32) {
    %c0_i32 = arith.constant 0 : i32
    %c0_i32_0 = arith.constant 0 : i32
    %c0_i32_1 = arith.constant 0 : i32
    return %c0_i32, %c0_i32_0 : i32, i32
  }
  func.func @transform_5(%arg0: i32, %arg1: memref<2x8xi32, #tpu.memory_space<smem>>) -> (i32, i32, i32) {
    %c0_i32 = arith.constant 0 : i32
    %c0_i32_0 = arith.constant 0 : i32
    %c0_i32_1 = arith.constant 0 : i32
    %c0_i32_2 = arith.constant 0 : i32
    return %c0_i32, %c0_i32_0, %c0_i32_1 : i32, i32, i32
  }
  func.func @transform_6(%arg0: i32, %arg1: memref<2x8xi32, #tpu.memory_space<smem>>) -> (i32, i32, i32) {
    %c0_i32 = arith.constant 0 : i32
    %c0_i32_0 = arith.constant 0 : i32
    %c0_i32_1 = arith.constant 0 : i32
    %c0_i32_2 = arith.constant 0 : i32
    return %c0_i32, %c0_i32_0, %c0_i32_1 : i32, i32, i32
  }
  func.func @transform_7(%arg0: i32, %arg1: memref<2x8xi32, #tpu.memory_space<smem>>) -> (i32, i32, i32) {
    %c0_i32 = arith.constant 0 : i32
    %c0_i32_0 = arith.constant 0 : i32
    %c0_i32_1 = arith.constant 0 : i32
    %c0_i32_2 = arith.constant 0 : i32
    return %c0_i32, %c0_i32_0, %c0_i32_1 : i32, i32, i32
  }
  func.func @transform_8(%arg0: i32, %arg1: memref<2x8xi32, #tpu.memory_space<smem>>) -> (i32, i32, i32) {
    %c0_i32 = arith.constant 0 : i32
    %c0_i32_0 = arith.constant 0 : i32
    %c0_i32_1 = arith.constant 0 : i32
    %c0_i32_2 = arith.constant 0 : i32
    return %c0_i32, %c0_i32_0, %c0_i32_1 : i32, i32, i32
  }
  func.func @transform_9(%arg0: i32, %arg1: memref<2x8xi32, #tpu.memory_space<smem>>) -> (i32, i32, i32) {
    %c0_i32 = arith.constant 0 : i32
    %c0_i32_0 = arith.constant 0 : i32
    %c0_i32_1 = arith.constant 0 : i32
    %c0_i32_2 = arith.constant 0 : i32
    return %c0_i32, %c0_i32_0, %c0_i32_1 : i32, i32, i32
  }
  func.func @transform_10(%arg0: i32, %arg1: memref<2x8xi32, #tpu.memory_space<smem>>) -> (i32, i32, i32) {
    %c0_i32 = arith.constant 0 : i32
    %c0_i32_0 = arith.constant 0 : i32
    %c0_i32_1 = arith.constant 0 : i32
    %c0_i32_2 = arith.constant 0 : i32
    return %c0_i32, %c0_i32_0, %c0_i32_1 : i32, i32, i32
  }
  func.func @transform_11(%arg0: i32, %arg1: memref<2x8xi32, #tpu.memory_space<smem>>) -> (i32, i32, i32) {
    %c0_i32 = arith.constant 0 : i32
    %c0_i32_0 = arith.constant 0 : i32
    %c0_i32_1 = arith.constant 0 : i32
    %c0_i32_2 = arith.constant 0 : i32
    return %c0_i32, %c0_i32_0, %c0_i32_1 : i32, i32, i32
  }
  func.func @transform_12(%arg0: i32, %arg1: memref<2x8xi32, #tpu.memory_space<smem>>) -> (i32, i32, i32) {
    %c0_i32 = arith.constant 0 : i32
    %c0_i32_0 = arith.constant 0 : i32
    %c0_i32_1 = arith.constant 0 : i32
    %c0_i32_2 = arith.constant 0 : i32
    return %c0_i32, %c0_i32_0, %c0_i32_1 : i32, i32, i32
  }
  func.func @transform_13(%arg0: i32, %arg1: memref<2x8xi32, #tpu.memory_space<smem>>) -> (i32, i32, i32) {
    %c0_i32 = arith.constant 0 : i32
    %c0_i32_0 = arith.constant 0 : i32
    %c0_i32_1 = arith.constant 0 : i32
    %c0_i32_2 = arith.constant 0 : i32
    return %c0_i32, %c0_i32_0, %c0_i32_1 : i32, i32, i32
  }
  func.func @transform_14(%arg0: i32, %arg1: memref<2x8xi32, #tpu.memory_space<smem>>) -> (i32, i32, i32) {
    %c0_i32 = arith.constant 0 : i32
    %c0_i32_0 = arith.constant 0 : i32
    %c0_i32_1 = arith.constant 0 : i32
    %c0_i32_2 = arith.constant 0 : i32
    return %c0_i32, %c0_i32_0, %c0_i32_1 : i32, i32, i32
  }
  func.func @transform_15(%arg0: i32, %arg1: memref<2x8xi32, #tpu.memory_space<smem>>) -> (i32, i32, i32) {
    %c0_i32 = arith.constant 0 : i32
    %c0_i32_0 = arith.constant 0 : i32
    %c0_i32_1 = arith.constant 0 : i32
    %c0_i32_2 = arith.constant 0 : i32
    return %c0_i32, %c0_i32_0, %c0_i32_1 : i32, i32, i32
  }
  func.func @transform_16(%arg0: i32, %arg1: memref<2x8xi32, #tpu.memory_space<smem>>) -> (i32, i32, i32) {
    %c0_i32 = arith.constant 0 : i32
    %c0_i32_0 = arith.constant 0 : i32
    %c0_i32_1 = arith.constant 0 : i32
    %c0_i32_2 = arith.constant 0 : i32
    return %c0_i32, %c0_i32_0, %c0_i32_1 : i32, i32, i32
  }
  func.func @transform_17(%arg0: i32, %arg1: memref<2x8xi32, #tpu.memory_space<smem>>) -> (i32, i32) {
    %c0_i32 = arith.constant 0 : i32
    %c0_i32_0 = arith.constant 0 : i32
    %c0_i32_1 = arith.constant 0 : i32
    return %c0_i32, %c0_i32_0 : i32, i32
  }
  func.func @transform_18(%arg0: i32, %arg1: memref<2x8xi32, #tpu.memory_space<smem>>) -> (i32, i32) {
    %c0_i32 = arith.constant 0 : i32
    %c0_i32_0 = arith.constant 0 : i32
    %c0_i32_1 = arith.constant 0 : i32
    return %c0_i32, %c0_i32_0 : i32, i32
  }
  func.func @transform_19(%arg0: i32, %arg1: memref<2x8xi32, #tpu.memory_space<smem>>) -> (i32, i32, i32) {
    %c0_i32 = arith.constant 0 : i32
    %c0_i32_0 = arith.constant 0 : i32
    %c0_i32_1 = arith.constant 0 : i32
    return %arg0, %c0_i32, %c0_i32_0 : i32, i32, i32
  }
}

</mosaic_0001>

<bundles_post_ra>
// kernel: distilbert_w_dropout_forward.1
= control target key start
LH: loop header
LB: loop body
LE: loop exit
PB: predicated region body
PF: predicated region fallthrough
CT: control target
= control target key end

     0   :  { %s3504_s0 = inlined_call_operand.vmem [shape: s32[2,8], index: 0, kind: input, shape index: {}]   ;;  %s3505_s1 = inlined_call_operand.vmem [shape: s32[2,8], index: 1, kind: input, shape index: {}]   ;;  %s3506_s2 = inlined_call_operand.vmem [shape: f32[104,32], index: 2, kind: input, shape index: {}]   ;;  %s3507_s3 = inlined_call_operand.vmem [shape: f32[8,32], index: 3, kind: input, shape index: {}]   ;;  %s3508_s4 = inlined_call_operand.vmem [shape: f32[1,32], index: 4, kind: input, shape index: {}]   ;;  %s3509_s5 = inlined_call_operand.vmem [shape: f32[1,32], index: 5, kind: input, shape index: {}]   ;;  %s3510_s6 = inlined_call_operand.vmem [shape: bf16[2,32,96], index: 6, kind: input, shape index: {}]   ;;  %s3511_s7 = inlined_call_operand.vmem [shape: f32[2,1,96], index: 7, kind: input, shape index: {}]   ;;  %s3512_s8 = inlined_call_operand.vmem [shape: bf16[2,32,32], index: 8, kind: input, shape index: {}]   ;;  %s3513_s9 = inlined_call_operand.vmem [shape: f32[2,1,32], index: 9, kind: input, shape index: {}]   ;;  %s3514_s10 = inlined_call_operand.vmem [shape: f32[2,1,32], index: 10, kind: input, shape index: {}]   ;;  %s3515_s11 = inlined_call_operand.vmem [shape: f32[2,1,32], index: 11, kind: input, shape index: {}]   ;;  %s3516_s12 = inlined_call_operand.vmem [shape: bf16[2,32,128], index: 12, kind: input, shape index: {}]   ;;  %s3517_s13 = inlined_call_operand.vmem [shape: f32[2,1,128], index: 13, kind: input, shape index: {}]   ;;  %s3518_s14 = inlined_call_operand.vmem [shape: bf16[2,128,32], index: 14, kind: input, shape index: {}]   ;;  %s3519_s15 = inlined_call_operand.vmem [shape: f32[2,1,32], index: 15, kind: input, shape index: {}]   ;;  %s3520_s16 = inlined_call_operand.vmem [shape: f32[2,1,32], index: 16, kind: input, shape index: {}]   ;;  %s3521_s17 = inlined_call_operand.vmem [shape: f32[2,1,32], index: 17, kind: input, shape index: {}]   ;;  %s3522_s18 = inlined_call_operand.vmem [shape: f32[1,32], index: 18, kind: input, shape index: {}]   ;;  %s3523_s20 = inlined_call_operand.vmem [shape: f32[2,1,1], index: 20, kind: output, shape index: {}]   ;;  %s3524_s19 = inlined_call_operand.<no memory space> [shape: f32[1,1], index: 19, kind: input, shape index: {}]  }
   0x1   :  { %3532 = sst [smem:[#allocation8_spill]] %s3504_s0  ;;  %v29_v0 = vstv %s3524_s19 }
   0x2   :  { %3533 = sst [smem:[#allocation9_spill]] %s3505_s1  ;;  %s3544_s23 = sld [smem:[#allocation8_spill]]  ;;  %30 = vst [vmem:[#allocation5] sm:$0x1] %v29_v0 }
   0x3   :  { %3534 = sst [smem:[#allocation10_spill]] %s3506_s2 }
   0x4   :  { %3535 = sst [smem:[#allocation11_spill]] %s3507_s3 }
   0x5   :  { %3536 = sst [smem:[#allocation12_spill]] %s3508_s4 }
   0x6   :  { %3537 = sst [smem:[#allocation13_spill]] %s3515_s11 }
   0x7   :  { %3538 = sst [smem:[#allocation14_spill]] %s3517_s13 }
   0x8   :  { %3539 = sst [smem:[#allocation15_spill]] %s3519_s15  ;;  %s25_s13 = sshll.u32 %s3544_s23, 4  ;;  %s26_s13 = int_to_ptr.vmem [resolvable:$true] %s25_s13 }
   0x9   :  { %3540 = sst [smem:[#allocation16_spill]] %s3520_s16  ;;  %s2917_s25 = scalar_lea.vmem %s26_s13, 32 }
   0xa   :  { %3541 = sst [smem:[#allocation17_spill]] %s3521_s17  ;;  %p2918_p0 = scmp.ne.s32.totalorder %s26_s13, %s2917_s25 }
   0xb   :  { %3542 = sst [smem:[#allocation18_spill]] %s3522_s18  ;;  %p2922_p1 = scmp.lt.s32.totalorder %s26_s13, %s26_s13 }
   0xc   :  { %3543 = sst [smem:[#allocation19_spill]] %s3523_s20  ;;  %p2923_p2 = scmp.lt.s32.totalorder %s2917_s25, %s2917_s25 }
   0xe   :  { %p2924_p3 = por %p2923_p2, %p2922_p1 }
  0x10   :  { %p2925_p4 = pnand %p2924_p3, %p2918_p0 }
  0x12   :  { %2928 = shalt.err (!%p2925_p4)  }
  0x13   :  { %s2939_s3 = smov [#allocation4]  }
  0x14   :  { %28 = dma.vmem_to_smem %s26_s13, 32, %s2939_s3, [#allocation3] }
  0x15   :  { %2933 = dma.done.wait [#allocation3], 32 }
  0x16   :  { %2934 = vsyncadd [#allocation3], 4294967264 }
  0x17   :  { %32 = sfence }
  0x18   :  { %s3062_s26 = smov 0  }
  0x19 LB: > { %3545 = sst [smem:[#allocation7_spill]] %s2937_s26  ;;  %s3068_s19 = sadd.s32 4294967295, %s2937_s26   ;;  %s2937_s26 = sphi %s3062_s26, %s38_s26  }
  0x1a   : > { %p2463_p5 = scmp.ge.s32.totalorder %s2937_s26, 1  ;;  %p536_p6 = scmp.lt.s32.totalorder %s2937_s26, 3 }
  0x1c   : > { %p537_p7 = pnand %p2463_p5, %p536_p6 }
  0x1d   : > { %s2464_s13 = sshll.u32 (!%p537_p7), %s3068_s19, 7  ;;  %vm593_vm0 = vcmask (!%p537_p7), 253952   ;;  %s3546_s26 = sld [smem:[#allocation10_spill]] (!%p537_p7)  ;;  %vm635_vm1 = vcmask (!%p537_p7), 261120   ;;  %v2843_v15 = vld [vmem:[%s3510_s6] sm:$0xff] (!%p537_p7)   ;;  %v2940_v16 = vmov (!%p537_p7), 0.0   ;;  %v758_v62 = vlaneseq (!%p537_p7) }
  0x1e   : > { %540 = sbr.rel (%p537_p7) target bundleno = 5052 (0x13bc), region = 96  ;;  %s590_s27 = sld [smem:[#allocation4 + %s2464_s13]] (!%p537_p7)  ;;  %2639 = vmatprep.subr.bf16.mxu1 (!%p537_p7), %v2940_v16  ;;  %vm2941_vm2 = vmmov (!%p537_p7), 0   ;;  %v2844_v17 = vld [vmem:[%s3510_s6 + $0x8] sm:$0xff] (!%p537_p7)   ;;  %2665 = vmatprep.subr.bf16.mxu0 (!%p537_p7), %v2940_v16  ;;  %v2466_v29 = vld [vmem:[%s3509_s5] ss:$0 sm:$0xff] (!%p537_p7) }
  0x1f   : > { %s595_s28 = sadd.s32 (!%p537_p7), 1, %s2464_s13  ;;  %s600_s29 = sadd.s32 (!%p537_p7), 2, %s2464_s13  ;;  %2643 = vmatprep.mubr.msk.bf16.mxu1 (!%p537_p7), %vm2941_vm2, %v2940_v16  ;;  %2640 = vmatpush3.bf16.msra.mxu1 (!%p537_p7), %v2843_v15  ;;  %v2467_v33 = vld [vmem:[%s3511_s7] ss:$0 sm:$0xff] (!%p537_p7)  ;;  %vm765_vm3 = vcmask (!%p537_p7), 64512   ;;  %v759_v0 = vshrl.u32 (!%p537_p7), %v758_v62, 7 }
  0x20   : > { %s596_s4 = sld [smem:[#allocation4 + %s595_s28]] (!%p537_p7)  ;;  %s605_s0 = sadd.s32 (!%p537_p7), 3, %s2464_s13  ;;  %2641 = vmatprep.subr.bf16.mxu1 (!%p537_p7), %v2940_v16  ;;  %2667 = vmatprep.mubr.msk.bf16.mxu0 (!%p537_p7), %vm2941_vm2, %v2940_v16  ;;  %vm1012_vm5 = vcmask (!%p537_p7), 1043456   ;;  %vm1213_vm6 = vcmask (!%p537_p7), 130048   ;;  %vm1215_vm7 = vcmask (!%p537_p7), 195584   ;;  %vm2414_vm8 = vcmask (!%p537_p7), 0  }
  0x21   : > { %s601_s30 = sld [smem:[#allocation4 + %s600_s29]] (!%p537_p7)  ;;  %s610_s1 = sadd.s32 (!%p537_p7), 4, %s2464_s13 }
  0x22   : > { %s606_s21 = sld [smem:[#allocation4 + %s605_s0]] (!%p537_p7)  ;;  %s615_s23 = sadd.s32 (!%p537_p7), 5, %s2464_s13 }
  0x23   : > { %s611_s22 = sld [smem:[#allocation4 + %s610_s1]] (!%p537_p7)  ;;  %s620_s2 = sadd.s32 (!%p537_p7), 6, %s2464_s13  ;;  %2642 = vmatpush3.bf16.msra.mxu1 (!%p537_p7), %v2844_v17 }
  0x24   : > { %s616_s24 = sld [smem:[#allocation4 + %s615_s23]] (!%p537_p7)  ;;  %s3547_s20 = smov (!%p537_p7), %s3546_s26  ;;  %2647 = vmatprep.subr.bf16.mxu1 (!%p537_p7), %v2940_v16 }
  0x25   : > { %s591_s18 = scalar_lea.vmem %s3546_s26, %s590_s27  ;;  %s621_s17 = sld [smem:[#allocation4 + %s620_s2]] }
  0x26   : > { %v592_v1 = vld [vmem:[%s591_s18] sm:$0x1]  ;;  %s597_s11 = scalar_lea.vmem %s3547_s20, %s596_s4  ;;  %s625_s28 = sadd.s32 7, %s2464_s13 }
  0x27   : > { %594 = vst.msk [vmem:[#allocation2] sm:$0x1] %vm593_vm0, %v592_v1  ;;  %v598_v2 = vld [vmem:[%s597_s11] sm:$0x1]  ;;  %s602_s1 = scalar_lea.vmem %s3547_s20, %s601_s30  ;;  %s626_s23 = sld [smem:[#allocation4 + %s625_s28]]  ;;  %v760_v1 = vsub.s32 0, %v759_v0 }
  0x28   : > { %599 = vst.msk [vmem:[#allocation2 + $0x1] sm:$0x1] %vm593_vm0, %v598_v2  ;;  %v603_v3 = vld [vmem:[%s602_s1] sm:$0x1]  ;;  %s607_s18 = scalar_lea.vmem %s3547_s20, %s606_s21  ;;  %s3548_s0 = sld [smem:[#allocation11_spill]] }
  0x29   : > { %604 = vst.msk [vmem:[#allocation2 + $0x2] sm:$0x1] %vm593_vm0, %v603_v3  ;;  %v608_v4 = vld [vmem:[%s607_s18] sm:$0x1]  ;;  %s612_s13 = scalar_lea.vmem %s3547_s20, %s611_s22  ;;  %s3549_s15 = sld [smem:[#allocation12_spill]] }
  0x2a   : > { %609 = vst.msk [vmem:[#allocation2 + $0x3] sm:$0x1] %vm593_vm0, %v608_v4  ;;  %v613_v5 = vld [vmem:[%s612_s13] sm:$0x1]  ;;  %s617_s4 = scalar_lea.vmem %s3547_s20, %s616_s24  ;;  %s2943_s30 = smov 120  }
  0x2b   : > { %614 = vst.msk [vmem:[#allocation2 + $0x4] sm:$0x1] %vm593_vm0, %v613_v5  ;;  %v618_v6 = vld [vmem:[%s617_s4] sm:$0x1]  ;;  %s622_s21 = scalar_lea.vmem %s3547_s20, %s621_s17  ;;  %s2942_s4 = smov 104  }
  0x2c   : > { %619 = vst.msk [vmem:[#allocation2 + $0x5] sm:$0x1] %vm593_vm0, %v618_v6  ;;  %v623_v7 = vld [vmem:[%s622_s21] sm:$0x1]  ;;  %s2944_s2 = smov 112   ;;  %s2945_s21 = smov 96  }
  0x2d   : > { %624 = vst.msk [vmem:[#allocation2 + $0x6] sm:$0x1] %vm593_vm0, %v623_v7  ;;  %s627_s28 = scalar_lea.vmem %s3547_s20, %s626_s23  ;;  %v2946_v2 = vmov -1e+09   ;;  %s2947_s29 = smov 64  }
  0x2e   : > { %v628_v8 = vld [vmem:[%s627_s28] sm:$0x1]  ;;  %s3550_s28 = sld [smem:[#allocation9_spill]]  ;;  %s2948_s25 = smov 8  }
  0x2f   : > { %629 = vst.msk [vmem:[#allocation2 + $0x7] sm:$0x1] %vm593_vm0, %v628_v8  ;;  %v631_v9 = vld [vmem:[%s3548_s0] sm:$0xff]  ;;  %s2949_s26 = smov 16   ;;  %s2950_s18 = smov 24  }
  0x30   : > { %v2465_v27 = vld [vmem:[%s3549_s15] ss:$0 sm:$0xff]  ;;  %s3551_s23 = sld [smem:[#allocation13_spill]]  ;;  %s3552_s27 = sld [smem:[#allocation14_spill]] }
  0x31   : > { %s3554_s13 = sld [smem:[#allocation16_spill]]  ;;  %s3555_s3 = sld [smem:[#allocation17_spill]] }
  0x32   : > { %s3556_s17 = sld [smem:[#allocation18_spill]]  ;;  %p585_p8 = scmp.lt.s32.totalorder %s3068_s19, 1 }
  0x33   : > { %s3557_s16 = sld [smem:[#allocation19_spill]] }
  0x34   : > { %s665_s24 = scalar_lea.vmem %s3550_s28, %s3068_s19  ;;  %s3553_s28 = sld [smem:[#allocation15_spill]] }
  0x35   : > { %v666_v63 = vld [vmem:[%s665_s24] sm:$0x1]  ;;  %s3560_s19 = smov (!%p585_p8, %s3068_s19), 1 }
  0x36   : > { %v630_v10 = vld [vmem:[#allocation2] sm:$0xff]  ;;  %vm667_vm4 = vcmp.gt.s32.totalorder %v666_v63, 0 }
  0x37   : > { %v632_v11 = vadd.f32 %v631_v9, %v630_v10  ;;  %v668_v3 = vsel %vm667_vm4, 0.0, %v2946_v2 }
  0x38   : > { %v3183_v4 = vrot.slane %v668_v3, %v760_v1 }
  0x39   : > { %v636_v12 = vsel %vm635_vm1, %v632_v11, 0.0  ;;  %v639_v13 = vmul.f32 %v632_v11, %v632_v11  ;;  %s587_s11 = scalar_lea.vmem %s3557_s16, %s3560_s19 }
  0x3a   : > { %637 = vadd.xlane.f32.xlu0 %v636_v12 }
  0x3b   : > { %v640_v14 = vsel %vm635_vm1, %v639_v13, 0.0 }
  0x3e   : > { %641 = vadd.xlane.f32.xlu0 %v640_v14 }
  0xc7   : > { %v638_v18 = vpop.xlane.xlu0 %637 }
  0xc8   : > { %v643_v19 = vmul.f32 0.03125, %v638_v18 }
  0xca   : > { %v645_v21 = vmul.f32 %v643_v19, %v643_v19  ;;  %v647_v25 = vsub.f32 %v632_v11, %v643_v19 }
  0xcb   : > { %v642_v20 = vpop.xlane.xlu0 %641 }
  0xcc   : > { %v644_v22 = vmul.f32 0.03125, %v642_v20 }
  0xce   : > { %v646_v23 = vsub.f32 %v644_v22, %v645_v21 }
  0xd0   : > { %v648_v24 = vadd.f32 1e-12, %v646_v23 }
  0xd2   : > { %2871 = vrsqrt.f32 %v648_v24 }
  0xdc   : > { %v2872_v26 = vpop.eup %2871 }
  0xdd   : > { %v650_v28 = vmul.f32 %v2872_v26, %v647_v25 }
  0xdf   : > { %v657_v30 = vmul.f32 %v2465_v27, %v650_v28 }
  0xe1   : > { %v3130_v31 = vadd.f32 %v2466_v29, %v657_v30 }
  0xe3   : > { %v669_v32 = vpack.c.bf16 %v3130_v31, %v3130_v31 }
  0xe5   : > { %2644 = vmatmul.mubr.msk.bf16.vlgmr.msra.gmra.mrb[0].mxu1 %vm635_vm1, %v669_v32 }
  0xe6   : > { %2649 = vmatprep.mubr.msk.bf16.mxu1 %vm2941_vm2, %v2940_v16 }
 0x1b8   : > { %v730_v34 = vpop.f32.mrb[0].mxu1 }
 0x1b9   : > { %v731_v35 = vadd.f32 %v2467_v33, %v730_v34  ;;  %v2645_v36 = vpop.f32.mrb[1].mxu1 }
 0x1ba   : > { %v733_v37 = vpop.f32.mrb[2].mxu1 }
 0x1bb   : > { %743 = vrot.lane.b32.xlu0 %v731_v35, %s2942_s4  ;;  %737 = vrot.lane.b32.xlu1 %v731_v35, %s2943_s30  ;;  %v2646_v38 = vpop.f32.mrb[3].mxu1  ;;  %v3143_v39 = vpack.c.bf16 %v731_v35, %v731_v35  ;;  %v746_v48 = vmul.f32 0.35355338, %v731_v35 }
 0x1bd   : > { %v750_v49 = vpack.c.bf16 %v746_v48, %v746_v48 }
 0x1bf   : > { %740 = vrot.lane.b32.xlu1 %v731_v35, %s2944_s2 }
 0x1c3   : > { %763 = vrot.lane.b32.xlu1 %v3143_v39, %s2945_s21 }
 0x22d   : > { %v738_v40 = vpop.permute.xlu1 %737  ;;  %v744_v44 = vpop.permute.xlu0 %743 }
 0x22e   : > { %v3147_v41 = vpack.c.bf16 %v738_v40, %v738_v40  ;;  %v3155_v46 = vpack.c.bf16 %v744_v44, %v744_v44  ;;  %v747_v52 = vmul.f32 0.35355338, %v738_v40  ;;  %v749_v58 = vmul.f32 0.35355338, %v744_v44 }
 0x230   : > { %813 = vrot.lane.b32.xlu1 %v3147_v41, %s2945_s21  ;;  %v751_v54 = vpack.c.bf16 %v747_v52, %v747_v52  ;;  %v753_v60 = vpack.c.bf16 %v749_v58, %v749_v58 }
 0x231   : > { %v741_v42 = vpop.permute.xlu1 %740 }
 0x232   : > { %v3151_v43 = vpack.c.bf16 %v741_v42, %v741_v42  ;;  %v748_v59 = vmul.f32 0.35355338, %v741_v42 }
 0x234   : > { %862 = vrot.lane.b32.xlu1 %v3151_v43, %s2945_s21  ;;  %v752_v61 = vpack.c.bf16 %v748_v59, %v748_v59 }
 0x235   : > { %v764_v45 = vpop.permute.xlu1 %763 }
 0x236   : > { %v770_v47 = vsel %vm765_vm3, %v764_v45, 0 }
 0x237   : > { %2648 = vmatpush3.bf16.xpose.msra.mxu1 %v770_v47 }
 0x238   : > { %911 = vrot.lane.b32.xlu1 %v3155_v46, %s2945_s21  ;;  %2653 = vmatprep.subr.bf16.mxu1 %v2940_v16 }
 0x23e   : > { %2650 = vmatmul.mubr.msk.bf16.vlgmr.msra.gmra.mrb[4].mxu1 %vm765_vm3, %v750_v49 }
 0x23f   : > { %2655 = vmatprep.mubr.msk.bf16.mxu1 %vm2941_vm2, %v2940_v16 }
 0x2a2   : > { %v814_v50 = vpop.permute.xlu1 %813 }
 0x2a3   : > { %v819_v51 = vsel %vm765_vm3, %v814_v50, 0 }
 0x2a4   : > { %2654 = vmatpush3.bf16.xpose.msra.mxu1 %v819_v51 }
 0x2a5   : > { %2659 = vmatprep.subr.bf16.mxu1 %v2940_v16 }
 0x2a6   : > { %v863_v53 = vpop.permute.xlu1 %862 }
 0x2a7   : > { %v868_v56 = vsel %vm765_vm3, %v863_v53, 0 }
 0x2aa   : > { %v912_v55 = vpop.permute.xlu1 %911 }
 0x2ab   : > { %2656 = vmatmul.mubr.msk.bf16.vlgmr.msra.gmra.mrb[8].mxu1 %vm765_vm3, %v751_v54  ;;  %v917_v57 = vsel %vm765_vm3, %v912_v55, 0 }
 0x2ac   : > { %2660 = vmatpush3.bf16.xpose.msra.mxu1 %v868_v56  ;;  %2666 = vmatpush3.bf16.xpose.msra.mxu0 %v917_v57 }
 0x2ad   : > { %2661 = vmatprep.mubr.msk.bf16.mxu1 %vm2941_vm2, %v2940_v16  ;;  %2671 = vmatprep.subr.bf16.mxu1 %v2940_v16 }
 0x2ae   : > { %2677 = vmatprep.subr.bf16.mxu0 %v2940_v16 }
 0x2b3   : > { %2662 = vmatmul.mubr.msk.bf16.vlgmr.msra.gmra.mrb[12].mxu1 %vm765_vm3, %v752_v61  ;;  %2668 = vmatmul.mubr.msk.bf16.vlgmr.msra.gmra.mrb[0].mxu0 %vm765_vm3, %v753_v60 }
 0x2b4   : > { %2673 = vmatprep.mubr.msk.bf16.mxu1 %vm2941_vm2, %v2940_v16  ;;  %2679 = vmatprep.mubr.msk.bf16.mxu0 %vm2941_vm2, %v2940_v16 }
 0x311   : > { %v806_v5 = vpop.f32.mrb[4].mxu1 }
 0x312   : > { %v807_v6 = vadd.f32 %v806_v5, %v3183_v4  ;;  %v2651_v7 = vpop.f32.mrb[5].mxu1 }
 0x313   : > { %v809_v8 = vpop.f32.mrb[6].mxu1 }
 0x314   : > { %v2652_v9 = vpop.f32.mrb[7].mxu1  ;;  %v959_v10 = vsel %vm765_vm3, %v807_v6, -inf }
 0x315   : > { %960 = vmax.xlane.f32.xlu1 %v959_v10 }
 0x37e   : > { %v855_v11 = vpop.f32.mrb[8].mxu1 }
 0x37f   : > { %v856_v12 = vadd.f32 %v855_v11, %v3183_v4  ;;  %v2657_v13 = vpop.f32.mrb[9].mxu1 }
 0x380   : > { %v858_v14 = vpop.f32.mrb[10].mxu1 }
 0x381   : > { %v2658_v15 = vpop.f32.mrb[11].mxu1  ;;  %v962_v17 = vsel %vm765_vm3, %v856_v12, -inf }
 0x382   : > { %963 = vmax.xlane.f32.xlu0 %v962_v17  ;;  %v2845_v17 = vld [vmem:[%s3512_s8] sm:$0xff]  }
 0x386   : > { %v904_v18 = vpop.f32.mrb[12].mxu1  ;;  %v953_v19 = vpop.f32.mrb[0].mxu0 }
 0x387   : > { %v905_v20 = vadd.f32 %v904_v18, %v3183_v4  ;;  %v954_v21 = vadd.f32 %v953_v19, %v3183_v4  ;;  %v2663_v22 = vpop.f32.mrb[13].mxu1  ;;  %v2669_v23 = vpop.f32.mrb[1].mxu0  ;;  %v2846_v18 = vld [vmem:[%s3512_s8 + $0x8] sm:$0xff]  }
 0x388   : > { %v907_v24 = vpop.f32.mrb[14].mxu1  ;;  %v956_v25 = vpop.f32.mrb[2].mxu0 }
 0x389   : > { %v2664_v26 = vpop.f32.mrb[15].mxu1  ;;  %v2670_v27 = vpop.f32.mrb[3].mxu0  ;;  %v968_v28 = vsel %vm765_vm3, %v954_v21, -inf  ;;  %v965_v29 = vsel %vm765_vm3, %v905_v20, -inf }
 0x38a   : > { %969 = vmax.xlane.f32.xlu0 %v968_v28  ;;  %966 = vmax.xlane.f32.xlu1 %v965_v29 }
 0x39b   : > { %1007 = vrot.lane.b32.xlu1 %v3143_v39, %s2947_s29 }
 0x3a2   : > { %v961_v30 = vpop.xlane.xlu1 %960 }
 0x3a3   : > { %v971_v32 = vsub.f32 %v807_v6, %v961_v30 }
 0x3a5   : > { %v975_v33 = vmul.f32 1.442695, %v971_v32 }
 0x3a7   : > { %2873 = vpow2.f32 %v975_v33 }
 0x3b1   : > { %v2874_v34 = vpop.eup %2873 }
 0x3b2   : > { %v983_v35 = vsel %vm765_vm3, %v2874_v34, 0.0 }
 0x3bf   : > { %984 = vadd.xlane.f32.xlu1 %v983_v35 }
 0x3d0   : > { %1104 = vrot.lane.b32.xlu1 %v3151_v43, %s2947_s29 }
 0x40f   : > { %v964_v36 = vpop.xlane.xlu0 %963 }
 0x410   : > { %v972_v37 = vsub.f32 %v856_v12, %v964_v36 }
 0x412   : > { %v977_v38 = vmul.f32 1.442695, %v972_v37 }
 0x414   : > { %2875 = vpow2.f32 %v977_v38 }
 0x417   : > { %v970_v40 = vpop.xlane.xlu0 %969  ;;  %v967_v42 = vpop.xlane.xlu1 %966 }
 0x418   : > { %v974_v44 = vsub.f32 %v954_v21, %v970_v40  ;;  %v973_v45 = vsub.f32 %v905_v20, %v967_v42  ;;  %v2479_v40 = vld [vmem:[%s3513_s9] ss:$0 sm:$0xff] }
 0x41a   : > { %v981_v39 = vmul.f32 1.442695, %v974_v44  ;;  %v979_v47 = vmul.f32 1.442695, %v973_v45 }
 0x41b   : > { %v1008_v48 = vpop.permute.xlu1 %1007 }
 0x41c   : > { %2877 = vpow2.f32 %v981_v39  ;;  %v1014_v49 = vsel %vm1012_vm5, %v1008_v48, 0 }
 0x41d   : > { %2879 = vpow2.f32 %v979_v47  ;;  %2672 = vmatpush3.bf16.msra.mxu1 %v1014_v49 }
 0x41e   : > { %v2876_v50 = vpop.eup %2875  ;;  %2683 = vmatprep.subr.bf16.mxu1 %v2940_v16 }
 0x41f   : > { %v986_v43 = vsel %vm765_vm3, %v2876_v50, 0.0 }
 0x420   : > { %987 = vadd.xlane.f32.xlu0 %v986_v43 }
 0x426   : > { %v2878_v51 = vpop.eup %2877 }
 0x427   : > { %v2880_v52 = vpop.eup %2879  ;;  %v992_v53 = vsel %vm765_vm3, %v2878_v51, 0.0 }
 0x428   : > { %993 = vadd.xlane.f32.xlu0 %v992_v53  ;;  %v989_v54 = vsel %vm765_vm3, %v2880_v52, 0.0 }
 0x429   : > { %990 = vadd.xlane.f32.xlu1 %v989_v54 }
 0x43a   : > { %1152 = vrot.lane.b32.xlu1 %v3155_v46, %s2947_s29 }
 0x43e   : > { %1056 = vrot.lane.b32.xlu0 %v3147_v41, %s2947_s29 }
 0x44c   : > { %v985_v55 = vpop.xlane.xlu1 %984 }
 0x44d   : > { %2881 = vrcp.f32 %v985_v55 }
 0x450   : > { %v1105_v58 = vpop.permute.xlu1 %1104 }
 0x451   : > { %v1110_v60 = vsel %vm1012_vm5, %v1105_v58, 0 }
 0x457   : > { %v2882_v56 = vpop.eup %2881 }
 0x458   : > { %v999_v57 = vmul.f32 %v2882_v56, %v2874_v34 }
 0x45a   : > { %v1003_v59 = vpack.c.bf16 %v999_v57, %v999_v57 }
 0x45c   : > { %2674 = vmatmul.mubr.msk.bf16.vlgmr.msra.gmra.mrb[16].mxu1 %vm765_vm3, %v1003_v59 }
 0x45d   : > { %2684 = vmatpush3.bf16.msra.mxu1 %v1110_v60  ;;  %2685 = vmatprep.mubr.msk.bf16.mxu1 %vm2941_vm2, %v2940_v16 }
 0x45e   : > { %2695 = vmatprep.subr.bf16.mxu1 %v2940_v16 }
 0x4ad   : > { %v988_v46 = vpop.xlane.xlu0 %987 }
 0x4ae   : > { %2883 = vrcp.f32 %v988_v46 }
 0x4b5   : > { %v994_v61 = vpop.xlane.xlu0 %993 }
 0x4b6   : > { %2885 = vrcp.f32 %v994_v61  ;;  %v991_v41 = vpop.xlane.xlu1 %990  ;;  %v2483_v61 = vld [vmem:[%s3514_s10] ss:$0 sm:$0xff] }
 0x4b7   : > { %2887 = vrcp.f32 %v991_v41 }
 0x4b8   : > { %v2884_v62 = vpop.eup %2883 }
 0x4b9   : > { %v1000_v63 = vmul.f32 %v2884_v62, %v2876_v50  ;;  %v1057_v0 = vpop.permute.xlu0 %1056  ;;  %v2484_v62 = vld [vmem:[%s3551_s23] ss:$0 sm:$0xff] }
 0x4ba   : > { %v1062_v1 = vsel %vm1012_vm5, %v1057_v0, 0  ;;  %v1153_v2 = vpop.permute.xlu1 %1152 }
 0x4bb   : > { %2678 = vmatpush3.bf16.msra.mxu0 %v1062_v1  ;;  %v1004_v3 = vpack.c.bf16 %v1000_v63, %v1000_v63  ;;  %v1158_v5 = vsel %vm1012_vm5, %v1153_v2, 0  ;;  %v2850_v2 = vld [vmem:[%s3518_s14 + $0x8] sm:$0xff]  }
 0x4bc   : > { %2689 = vmatprep.subr.bf16.mxu0 %v2940_v16 }
 0x4be   : > { %2680 = vmatmul.mubr.msk.bf16.vlgmr.msra.gmra.mrb[4].mxu0 %vm765_vm3, %v1004_v3  ;;  %v2851_v3 = vld [vmem:[%s3518_s14 + $0x10] sm:$0xff]  }
 0x4bf   : > { %2690 = vmatpush3.bf16.msra.mxu0 %v1158_v5  ;;  %2691 = vmatprep.mubr.msk.bf16.mxu0 %vm2941_vm2, %v2940_v16  ;;  %v2852_v5 = vld [vmem:[%s3518_s14 + $0x18] sm:$0xff]  }
 0x4c0   : > { %v2886_v6 = vpop.eup %2885  ;;  %2703 = vmatprep.subr.bf16.mxu0 %v2940_v16 }
 0x4c1   : > { %v2888_v7 = vpop.eup %2887  ;;  %v1002_v8 = vmul.f32 %v2886_v6, %v2878_v51  ;;  %v2847_v51 = vld [vmem:[%s3516_s12] sm:$0xff]  }
 0x4c2   : > { %v1001_v9 = vmul.f32 %v2888_v7, %v2880_v52  ;;  %v2848_v52 = vld [vmem:[%s3516_s12 + $0x8] sm:$0xff]   ;;  %v2853_v6 = vld [vmem:[%s3518_s14 + $0x20] sm:$0xff]  }
 0x4c3   : > { %v1006_v10 = vpack.c.bf16 %v1002_v8, %v1002_v8  ;;  %v2854_v7 = vld [vmem:[%s3518_s14 + $0x28] sm:$0xff]   ;;  %v2855_v8 = vld [vmem:[%s3518_s14 + $0x30] sm:$0xff]  }
 0x4c4   : > { %v1005_v11 = vpack.c.bf16 %v1001_v9, %v1001_v9  ;;  %v2856_v9 = vld [vmem:[%s3518_s14 + $0x38] sm:$0xff]  }
 0x4c6   : > { %2686 = vmatmul.mubr.msk.bf16.vlgmr.msra.gmra.mrb[20].mxu1 %vm765_vm3, %v1005_v11  ;;  %2692 = vmatmul.mubr.msk.bf16.vlgmr.msra.gmra.mrb[8].mxu0 %vm765_vm3, %v1006_v10  ;;  %v2485_v10 = vld [vmem:[%s3552_s27] ss:$0 sm:$0xff] }
 0x4c7   : > { %2699 = vmatprep.mubr.msk.bf16.mxu1 %vm2941_vm2, %v2940_v16  ;;  %2707 = vmatprep.mubr.msk.bf16.mxu0 %vm2941_vm2, %v2940_v16 }
 0x4c8   : > { %2696 = vmatpush3.bf16.msra.mxu1 %v2845_v17  ;;  %2704 = vmatpush3.bf16.msra.mxu0 %v2847_v51  ;;  %v2498_v51 = vld [vmem:[%s3554_s13] ss:$0 sm:$0xff] }
 0x4c9   : > { %2697 = vmatprep.subr.bf16.mxu1 %v2940_v16  ;;  %2705 = vmatprep.subr.bf16.mxu0 %v2940_v16 }
 0x4cc   : > { %2698 = vmatpush3.bf16.msra.mxu1 %v2846_v18  ;;  %2706 = vmatpush3.bf16.msra.mxu0 %v2848_v52 }
 0x4cd   : > { %2711 = vmatprep.subr.bf16.mxu1 %v2940_v16  ;;  %2731 = vmatprep.subr.bf16.mxu0 %v2940_v16 }
 0x52f   : > { %v1050_v12 = vpop.f32.mrb[16].mxu1 }
 0x530   : > { %v2675_v13 = vpop.f32.mrb[17].mxu1 }
 0x531   : > { %v1053_v14 = vpop.f32.mrb[18].mxu1 }
 0x532   : > { %v2676_v15 = vpop.f32.mrb[19].mxu1 }
 0x591   : > { %v1098_v19 = vpop.f32.mrb[4].mxu0 }
 0x592   : > { %1201 = vrot.lane.b32.xlu0 %v1098_v19, %s2948_s25  ;;  %v2681_v20 = vpop.f32.mrb[5].mxu0 }
 0x593   : > { %v1101_v21 = vpop.f32.mrb[6].mxu0 }
 0x594   : > { %v2682_v22 = vpop.f32.mrb[7].mxu0 }
 0x599   : > { %v1146_v23 = vpop.f32.mrb[20].mxu1  ;;  %v1194_v24 = vpop.f32.mrb[8].mxu0 }
 0x59a   : > { %1205 = vrot.lane.b32.xlu1 %v1146_v23, %s2949_s26  ;;  %v2687_v25 = vpop.f32.mrb[21].mxu1  ;;  %1209 = vrot.lane.b32.xlu0 %v1194_v24, %s2950_s18  ;;  %v2693_v26 = vpop.f32.mrb[9].mxu0 }
 0x59b   : > { %v1149_v27 = vpop.f32.mrb[22].mxu1  ;;  %v1197_v28 = vpop.f32.mrb[10].mxu0 }
 0x59c   : > { %v2688_v29 = vpop.f32.mrb[23].mxu1  ;;  %v2694_v30 = vpop.f32.mrb[11].mxu0  ;;  %v2489_v27 = vld [vmem:[%s3553_s28] ss:$0 sm:$0xff] }
 0x604   : > { %v1202_v32 = vpop.permute.xlu0 %1201 }
 0x605   : > { %v1212_v33 = vsel %vm765_vm3, %v1050_v12, %v1202_v32 }
 0x60c   : > { %v1206_v34 = vpop.permute.xlu1 %1205  ;;  %v1210_v35 = vpop.permute.xlu0 %1209 }
 0x60d   : > { %v1214_v36 = vsel %vm1213_vm6, %v1212_v33, %v1206_v34 }
 0x60e   : > { %v1216_v37 = vsel %vm1215_vm7, %v1214_v36, %v1210_v35 }
 0x60f   : > { %v1217_v38 = vpack.c.bf16 %v1216_v37, %v1216_v37 }
 0x611   : > { %2700 = vmatmul.mubr.msk.bf16.vlgmr.msra.gmra.mrb[24].mxu1 %vm635_vm1, %v1217_v38  ;;  %v2857_v38 = vld [vmem:[%s3510_s6 + $0x10] sm:$0xff]  }
 0x612   : > { %2727 = vmatprep.mubr.msk.bf16.mxu1 %vm2941_vm2, %v2940_v16 }
 0x6e4   : > { %v1278_v42 = vpop.f32.mrb[24].mxu1 }
 0x6e5   : > { %v1279_v44 = vadd.f32 %v2479_v40, %v1278_v42  ;;  %v2701_v45 = vpop.f32.mrb[25].mxu1  ;;  %v2858_v40 = vld [vmem:[%s3510_s6 + $0x18] sm:$0xff]  }
 0x6e6   : > { %v1281_v39 = vpop.f32.mrb[26].mxu1 }
 0x6e7   : > { %v1284_v47 = vadd.f32 %v1279_v44, %v3130_v31  ;;  %v2702_v48 = vpop.f32.mrb[27].mxu1  ;;  %v2849_v31 = vld [vmem:[%s3518_s14] sm:$0xff]  }
 0x6e8   : > { %2712 = vmatpush3.bf16.msra.mxu1 %v2849_v31  ;;  %v2499_v31 = vld [vmem:[%s3555_s3] ss:$0 sm:$0xff] }
 0x6e9   : > { %v1287_v49 = vsel %vm635_vm1, %v1284_v47, 0.0  ;;  %v1290_v50 = vmul.f32 %v1284_v47, %v1284_v47  ;;  %2713 = vmatprep.subr.bf16.mxu1 %v2940_v16 }
 0x6ea   : > { %1288 = vadd.xlane.f32.xlu1 %v1287_v49 }
 0x6eb   : > { %v1291_v43 = vsel %vm635_vm1, %v1290_v50, 0.0 }
 0x6ec   : > { %1292 = vadd.xlane.f32.xlu0 %v1291_v43  ;;  %2714 = vmatpush3.bf16.msra.mxu1 %v2850_v2 }
 0x6ed   : > { %2715 = vmatprep.subr.bf16.mxu1 %v2940_v16 }
 0x6f0   : > { %2716 = vmatpush3.bf16.msra.mxu1 %v2851_v3 }
 0x6f1   : > { %2717 = vmatprep.subr.bf16.mxu1 %v2940_v16 }
 0x6f4   : > { %2718 = vmatpush3.bf16.msra.mxu1 %v2852_v5 }
 0x6f5   : > { %2719 = vmatprep.subr.bf16.mxu1 %v2940_v16 }
 0x6f8   : > { %2720 = vmatpush3.bf16.msra.mxu1 %v2853_v6 }
 0x6f9   : > { %2721 = vmatprep.subr.bf16.mxu1 %v2940_v16 }
 0x6fc   : > { %2722 = vmatpush3.bf16.msra.mxu1 %v2854_v7 }
 0x6fd   : > { %2723 = vmatprep.subr.bf16.mxu1 %v2940_v16 }
 0x700   : > { %2724 = vmatpush3.bf16.msra.mxu1 %v2855_v8 }
 0x701   : > { %2725 = vmatprep.subr.bf16.mxu1 %v2940_v16 }
 0x704   : > { %2726 = vmatpush3.bf16.msra.mxu1 %v2856_v9 }
 0x705   : > { %2757 = vmatprep.subr.bf16.mxu1 %v2940_v16 }
 0x777   : > { %v1289_v53 = vpop.xlane.xlu1 %1288 }
 0x778   : > { %v1294_v54 = vmul.f32 0.03125, %v1289_v53 }
 0x779   : > { %v1293_v55 = vpop.xlane.xlu0 %1292 }
 0x77a   : > { %v1296_v56 = vmul.f32 %v1294_v54, %v1294_v54  ;;  %v1295_v57 = vmul.f32 0.03125, %v1293_v55  ;;  %v1298_v60 = vsub.f32 %v1284_v47, %v1294_v54 }
 0x77c   : > { %v1297_v58 = vsub.f32 %v1295_v57, %v1296_v56  ;;  %v2505_v56 = vld [vmem:[%s3511_s7 + $0x1] ss:$0 sm:$0xff] }
 0x77e   : > { %v1299_v59 = vadd.f32 1e-12, %v1297_v58 }
 0x780   : > { %2889 = vrsqrt.f32 %v1299_v59 }
 0x78a   : > { %v2890_v46 = vpop.eup %2889 }
 0x78b   : > { %v1301_v41 = vmul.f32 %v2890_v46, %v1298_v60 }
 0x78d   : > { %v1308_v63 = vmul.f32 %v2483_v61, %v1301_v41 }
 0x78f   : > { %v1315_v0 = vadd.f32 %v2484_v62, %v1308_v63 }
 0x791   : > { %v1316_v1 = vpack.c.bf16 %v1315_v0, %v1315_v0 }
 0x793   : > { %2708 = vmatmul.mubr.msk.bf16.vlgmr.msra.gmra.mrb[12].mxu0 %vm635_vm1, %v1316_v1 }
 0x794   : > { %2735 = vmatprep.mubr.msk.bf16.mxu0 %vm2941_vm2, %v2940_v16  ;;  %2732 = vmatpush3.bf16.msra.mxu0 %v2857_v38 }
 0x795   : > { %2733 = vmatprep.subr.bf16.mxu0 %v2940_v16 }
 0x798   : > { %2734 = vmatpush3.bf16.msra.mxu0 %v2858_v40 }
 0x799   : > { %2739 = vmatprep.subr.bf16.mxu0 %v2940_v16 }
 0x866   : > { %v1377_v11 = vpop.f32.mrb[12].mxu0 }
 0x867   : > { %v1378_v12 = vadd.f32 %v2485_v10, %v1377_v11  ;;  %v2709_v13 = vpop.f32.mrb[13].mxu0 }
 0x868   : > { %v1380_v14 = vpop.f32.mrb[14].mxu0 }
 0x869   : > { %v1384_v15 = vmul.f32 0.044715, %v1378_v12  ;;  %v2710_v17 = vpop.f32.mrb[15].mxu0  ;;  %v1383_v23 = vmul.f32 0.5, %v1378_v12 }
 0x86b   : > { %v1385_v18 = vmul.f32 %v1384_v15, %v1378_v12 }
 0x86d   : > { %v1386_v19 = vmul.f32 %v1385_v18, %v1378_v12 }
 0x86f   : > { %v1387_v20 = vadd.f32 %v1386_v19, %v1378_v12 }
 0x871   : > { %v1388_v21 = vmul.f32 0.7978846, %v1387_v20 }
 0x873   : > { %2891 = vtanh.f32 %v1388_v21 }
 0x87d   : > { %v2892_v22 = vpop.eup %2891 }
 0x87e   : > { %v1390_v24 = vadd.f32 1.0, %v2892_v22 }
 0x880   : > { %v1391_v25 = vmul.f32 %v1390_v24, %v1383_v23 }
 0x882   : > { %v1392_v26 = vpack.c.bf16 %v1391_v25, %v1391_v25 }
 0x884   : > { %2728 = vmatmul.mubr.bf16.vlgmr.msra.gmra.mrb[28].mxu1 %v1392_v26 }
 0x885   : > { %2759 = vmatprep.mubr.msk.bf16.mxu1 %vm2941_vm2, %v2940_v16 }
 0x957   : > { %v1498_v28 = vpop.f32.mrb[28].mxu1 }
 0x958   : > { %v1499_v29 = vadd.f32 %v2489_v27, %v1498_v28  ;;  %v2729_v30 = vpop.f32.mrb[29].mxu1 }
 0x959   : > { %v1501_v32 = vpop.f32.mrb[30].mxu1 }
 0x95a   : > { %v1504_v33 = vadd.f32 %v1499_v29, %v1315_v0  ;;  %v2730_v34 = vpop.f32.mrb[31].mxu1 }
 0x95c   : > { %v1507_v35 = vsel %vm635_vm1, %v1504_v33, 0.0  ;;  %v1510_v36 = vmul.f32 %v1504_v33, %v1504_v33 }
 0x95d   : > { %1508 = vadd.xlane.f32.xlu0 %v1507_v35 }
 0x95e   : > { %v1511_v37 = vsel %vm635_vm1, %v1510_v36, 0.0 }
 0x95f   : > { %1512 = vadd.xlane.f32.xlu1 %v1511_v37 }
 0x9ea   : > { %v1509_v42 = vpop.xlane.xlu0 %1508 }
 0x9eb   : > { %v1514_v44 = vmul.f32 0.03125, %v1509_v42 }
 0x9ec   : > { %v1513_v45 = vpop.xlane.xlu1 %1512 }
 0x9ed   : > { %v1516_v39 = vmul.f32 %v1514_v44, %v1514_v44  ;;  %v1515_v47 = vmul.f32 0.03125, %v1513_v45  ;;  %v1518_v50 = vsub.f32 %v1504_v33, %v1514_v44 }
 0x9ef   : > { %v1517_v48 = vsub.f32 %v1515_v47, %v1516_v39 }
 0x9f1   : > { %v1519_v49 = vadd.f32 1e-12, %v1517_v48 }
 0x9f3   : > { %2893 = vrsqrt.f32 %v1519_v49 }
 0x9fd   : > { %v2894_v43 = vpop.eup %2893 }
 0x9fe   : > { %v1521_v52 = vmul.f32 %v2894_v43, %v1518_v50 }
 0xa00   : > { %v1528_v53 = vmul.f32 %v2498_v51, %v1521_v52 }
 0xa02   : > { %v3321_v54 = vadd.f32 %v2499_v31, %v1528_v53 }
 0xa04   : > { %v1536_v55 = vpack.c.bf16 %v3321_v54, %v3321_v54 }
 0xa06   : > { %2736 = vmatmul.mubr.msk.bf16.vlgmr.msra.gmra.mrb[16].mxu0 %vm635_vm1, %v1536_v55 }
 0xa07   : > { %2741 = vmatprep.mubr.msk.bf16.mxu0 %vm2941_vm2, %v2940_v16 }
 0xad9   : > { %v1599_v57 = vpop.f32.mrb[16].mxu0 }
 0xada   : > { %v1600_v58 = vadd.f32 %v2505_v56, %v1599_v57  ;;  %v2737_v59 = vpop.f32.mrb[17].mxu0 }
 0xadb   : > { %v1602_v60 = vpop.f32.mrb[18].mxu0 }
 0xadc   : > { %1609 = vrot.lane.b32.xlu1 %v1600_v58, %s2944_s2  ;;  %1606 = vrot.lane.b32.xlu0 %v1600_v58, %s2943_s30  ;;  %v2738_v46 = vpop.f32.mrb[19].mxu0  ;;  %v3333_v61 = vpack.c.bf16 %v1600_v58, %v1600_v58  ;;  %v1615_v6 = vmul.f32 0.35355338, %v1600_v58 }
 0xade   : > { %v1619_v7 = vpack.c.bf16 %v1615_v6, %v1615_v6 }
 0xae0   : > { %1612 = vrot.lane.b32.xlu1 %v1600_v58, %s2942_s4  ;;  %1628 = vrot.lane.b32.xlu0 %v3333_v61, %s2945_s21 }
 0xb4e   : > { %v1610_v41 = vpop.permute.xlu1 %1609  ;;  %v1607_v62 = vpop.permute.xlu0 %1606 }
 0xb4f   : > { %v3338_v63 = vpack.c.bf16 %v1610_v41, %v1610_v41  ;;  %v3340_v0 = vpack.c.bf16 %v1607_v62, %v1607_v62  ;;  %v1616_v10 = vmul.f32 0.35355338, %v1607_v62  ;;  %v1617_v18 = vmul.f32 0.35355338, %v1610_v41 }
 0xb51   : > { %1677 = vrot.lane.b32.xlu1 %v3340_v0, %s2945_s21  ;;  %1726 = vrot.lane.b32.xlu0 %v3338_v63, %s2945_s21  ;;  %v1620_v14 = vpack.c.bf16 %v1616_v10, %v1616_v10  ;;  %v1621_v20 = vpack.c.bf16 %v1617_v18, %v1617_v18 }
 0xb52   : > { %v1613_v1 = vpop.permute.xlu1 %1612  ;;  %v1629_v2 = vpop.permute.xlu0 %1628 }
 0xb53   : > { %v3346_v3 = vpack.c.bf16 %v1613_v1, %v1613_v1  ;;  %v1634_v5 = vsel %vm765_vm3, %v1629_v2, 0  ;;  %v1618_v15 = vmul.f32 0.35355338, %v1613_v1 }
 0xb54   : > { %2740 = vmatpush3.bf16.xpose.msra.mxu0 %v1634_v5 }
 0xb55   : > { %1775 = vrot.lane.b32.xlu1 %v3346_v3, %s2945_s21  ;;  %2745 = vmatprep.subr.bf16.mxu0 %v2940_v16  ;;  %v1622_v19 = vpack.c.bf16 %v1618_v15, %v1618_v15 }
 0xb5b   : > { %2742 = vmatmul.mubr.msk.bf16.vlgmr.msra.gmra.mrb[20].mxu0 %vm765_vm3, %v1619_v7 }
 0xb5c   : > { %2747 = vmatprep.mubr.msk.bf16.mxu0 %vm2941_vm2, %v2940_v16 }
 0xbc3   : > { %v1678_v8 = vpop.permute.xlu1 %1677  ;;  %v1727_v13 = vpop.permute.xlu0 %1726 }
 0xbc4   : > { %v1683_v9 = vsel %vm765_vm3, %v1678_v8, 0  ;;  %v1732_v17 = vsel %vm765_vm3, %v1727_v13, 0 }
 0xbc5   : > { %2746 = vmatpush3.bf16.xpose.msra.mxu0 %v1683_v9 }
 0xbc6   : > { %2751 = vmatprep.subr.bf16.mxu0 %v2940_v16 }
 0xbc7   : > { %v1776_v11 = vpop.permute.xlu1 %1775 }
 0xbc8   : > { %v1781_v12 = vsel %vm765_vm3, %v1776_v11, 0 }
 0xbc9   : > { %2758 = vmatpush3.bf16.xpose.msra.mxu1 %v1781_v12 }
 0xbca   : > { %2769 = vmatprep.subr.bf16.mxu1 %v2940_v16 }
 0xbcc   : > { %2748 = vmatmul.mubr.msk.bf16.vlgmr.msra.gmra.mrb[24].mxu0 %vm765_vm3, %v1620_v14 }
 0xbcd   : > { %2752 = vmatpush3.bf16.xpose.msra.mxu0 %v1732_v17  ;;  %2753 = vmatprep.mubr.msk.bf16.mxu0 %vm2941_vm2, %v2940_v16 }
 0xbce   : > { %2763 = vmatprep.subr.bf16.mxu0 %v2940_v16 }
 0xbd0   : > { %2760 = vmatmul.mubr.msk.bf16.vlgmr.msra.gmra.mrb[32].mxu1 %vm765_vm3, %v1622_v19 }
 0xbd1   : > { %2771 = vmatprep.mubr.msk.bf16.mxu1 %vm2941_vm2, %v2940_v16 }
 0xbd4   : > { %2754 = vmatmul.mubr.msk.bf16.vlgmr.msra.gmra.mrb[28].mxu0 %vm765_vm3, %v1621_v20 }
 0xbd5   : > { %2765 = vmatprep.mubr.msk.bf16.mxu0 %vm2941_vm2, %v2940_v16 }
 0xc2e   : > { %v1670_v21 = vpop.f32.mrb[20].mxu0 }
 0xc2f   : > { %v1671_v22 = vadd.f32 %v1670_v21, %v3183_v4  ;;  %v2743_v23 = vpop.f32.mrb[21].mxu0 }
 0xc30   : > { %v1673_v24 = vpop.f32.mrb[22].mxu0 }
 0xc31   : > { %v2744_v25 = vpop.f32.mrb[23].mxu0  ;;  %v1823_v26 = vsel %vm765_vm3, %v1671_v22, -inf }
 0xc32   : > { %1824 = vmax.xlane.f32.xlu0 %v1823_v26 }
 0xc9f   : > { %v1719_v27 = vpop.f32.mrb[24].mxu0 }
 0xca0   : > { %v1720_v28 = vadd.f32 %v1719_v27, %v3183_v4  ;;  %v2749_v29 = vpop.f32.mrb[25].mxu0 }
 0xca1   : > { %v1722_v30 = vpop.f32.mrb[26].mxu0 }
 0xca2   : > { %v2750_v32 = vpop.f32.mrb[27].mxu0  ;;  %v1826_v33 = vsel %vm765_vm3, %v1720_v28, -inf }
 0xca3   : > { %1827 = vmax.xlane.f32.xlu1 %v1826_v33  ;;  %v1817_v34 = vpop.f32.mrb[32].mxu1  ;;  %v2859_v32 = vld [vmem:[%s3512_s8 + $0x10] sm:$0xff]   ;;  %v2860_v33 = vld [vmem:[%s3512_s8 + $0x18] sm:$0xff]  }
 0xca4   : > { %v2761_v35 = vpop.f32.mrb[33].mxu1  ;;  %v1818_v45 = vadd.f32 %v1817_v34, %v3183_v4 }
 0xca5   : > { %v1820_v36 = vpop.f32.mrb[34].mxu1 }
 0xca6   : > { %v2762_v37 = vpop.f32.mrb[35].mxu1  ;;  %v1832_v48 = vsel %vm765_vm3, %v1818_v45, -inf }
 0xca7   : > { %v1768_v38 = vpop.f32.mrb[28].mxu0 }
 0xca8   : > { %v1769_v40 = vadd.f32 %v1768_v38, %v3183_v4  ;;  %v2755_v42 = vpop.f32.mrb[29].mxu0 }
 0xca9   : > { %v1771_v44 = vpop.f32.mrb[30].mxu0 }
 0xcaa   : > { %v2756_v39 = vpop.f32.mrb[31].mxu0  ;;  %v1829_v47 = vsel %vm765_vm3, %v1769_v40, -inf }
 0xcab   : > { %1830 = vmax.xlane.f32.xlu0 %v1829_v47 }
 0xcaf   : > { %1833 = vmax.xlane.f32.xlu0 %v1832_v48 }
 0xcb4   : > { %1871 = vrot.lane.b32.xlu1 %v3333_v61, %s2947_s29 }
 0xcbf   : > { %v1825_v49 = vpop.xlane.xlu0 %1824 }
 0xcc0   : > { %v1835_v50 = vsub.f32 %v1671_v22, %v1825_v49 }
 0xcc2   : > { %v1839_v43 = vmul.f32 1.442695, %v1835_v50 }
 0xcc4   : > { %2895 = vpow2.f32 %v1839_v43 }
 0xcce   : > { %v2896_v51 = vpop.eup %2895 }
 0xccf   : > { %v1847_v52 = vsel %vm765_vm3, %v2896_v51, 0.0 }
 0xcd8   : > { %1848 = vadd.xlane.f32.xlu1 %v1847_v52 }
 0xce9   : > { %1967 = vrot.lane.b32.xlu1 %v3338_v63, %s2947_s29 }
 0xd30   : > { %v1828_v4 = vpop.xlane.xlu1 %1827 }
 0xd31   : > { %v1836_v31 = vsub.f32 %v1720_v28, %v1828_v4 }
 0xd33   : > { %v1841_v53 = vmul.f32 1.442695, %v1836_v31 }
 0xd34   : > { %v1872_v55 = vpop.permute.xlu1 %1871 }
 0xd35   : > { %2897 = vpow2.f32 %v1841_v53  ;;  %v1877_v56 = vsel %vm1012_vm5, %v1872_v55, 0  ;;  %v2522_v53 = vld [vmem:[%s3513_s9 + $0x1] ss:$0 sm:$0xff] }
 0xd36   : > { %2764 = vmatpush3.bf16.msra.mxu0 %v1877_v56 }
 0xd37   : > { %2775 = vmatprep.subr.bf16.mxu0 %v2940_v16 }
 0xd38   : > { %v1831_v57 = vpop.xlane.xlu0 %1830 }
 0xd39   : > { %v1837_v58 = vsub.f32 %v1769_v40, %v1831_v57 }
 0xd3b   : > { %v1843_v59 = vmul.f32 1.442695, %v1837_v58 }
 0xd3c   : > { %v1834_v60 = vpop.xlane.xlu0 %1833 }
 0xd3d   : > { %2899 = vpow2.f32 %v1843_v59  ;;  %v1838_v46 = vsub.f32 %v1818_v45, %v1834_v60 }
 0xd3f   : > { %v2898_v61 = vpop.eup %2897  ;;  %v1845_v41 = vmul.f32 1.442695, %v1838_v46 }
 0xd40   : > { %v1850_v62 = vsel %vm765_vm3, %v2898_v61, 0.0 }
 0xd41   : > { %2901 = vpow2.f32 %v1845_v41  ;;  %1851 = vadd.xlane.f32.xlu0 %v1850_v62  ;;  %v2861_v62 = vld [vmem:[%s3516_s12 + $0x10] sm:$0xff]  }
 0xd47   : > { %v2900_v63 = vpop.eup %2899 }
 0xd48   : > { %v1853_v1 = vsel %vm765_vm3, %v2900_v63, 0.0 }
 0xd49   : > { %1854 = vadd.xlane.f32.xlu1 %v1853_v1 }
 0xd4b   : > { %v2902_v2 = vpop.eup %2901 }
 0xd4c   : > { %v1856_v5 = vsel %vm765_vm3, %v2902_v2, 0.0 }
 0xd4d   : > { %1857 = vadd.xlane.f32.xlu0 %v1856_v5 }
 0xd5a   : > { %2015 = vrot.lane.b32.xlu1 %v3346_v3, %s2947_s29 }
 0xd63   : > { %1919 = vrot.lane.b32.xlu0 %v3340_v0, %s2947_s29 }
 0xd65   : > { %v1849_v6 = vpop.xlane.xlu1 %1848 }
 0xd66   : > { %2903 = vrcp.f32 %v1849_v6 }
 0xd69   : > { %v1968_v9 = vpop.permute.xlu1 %1967 }
 0xd6a   : > { %v1973_v11 = vsel %vm1012_vm5, %v1968_v9, 0 }
 0xd70   : > { %v2904_v7 = vpop.eup %2903 }
 0xd71   : > { %v1863_v8 = vmul.f32 %v2904_v7, %v2896_v51 }
 0xd73   : > { %v1867_v10 = vpack.c.bf16 %v1863_v8, %v1863_v8 }
 0xd75   : > { %2766 = vmatmul.mubr.msk.bf16.vlgmr.msra.gmra.mrb[32].mxu0 %vm765_vm3, %v1867_v10 }
 0xd76   : > { %2776 = vmatpush3.bf16.msra.mxu0 %v1973_v11  ;;  %2777 = vmatprep.mubr.msk.bf16.mxu0 %vm2941_vm2, %v2940_v16 }
 0xd77   : > { %2787 = vmatprep.subr.bf16.mxu0 %v2940_v16 }
 0xdce   : > { %v1852_v3 = vpop.xlane.xlu0 %1851 }
 0xdcf   : > { %2905 = vrcp.f32 %v1852_v3  ;;  %v2528_v3 = vld [vmem:[%s3514_s10 + $0x1] ss:$0 sm:$0xff] }
 0xdd6   : > { %v1855_v12 = vpop.xlane.xlu1 %1854 }
 0xdd7   : > { %2907 = vrcp.f32 %v1855_v12 }
 0xdd9   : > { %v2906_v0 = vpop.eup %2905 }
 0xdda   : > { %v1858_v13 = vpop.xlane.xlu0 %1857  ;;  %v1864_v14 = vmul.f32 %v2906_v0, %v2898_v61  ;;  %v2016_v18 = vpop.permute.xlu1 %2015  ;;  %v2529_v0 = vld [vmem:[%s3551_s23 + $0x1] ss:$0 sm:$0xff] }
 0xddb   : > { %2909 = vrcp.f32 %v1858_v13  ;;  %v2021_v22 = vsel %vm1012_vm5, %v2016_v18, 0  ;;  %v2865_v18 = vld [vmem:[%s3518_s14 + $0x50] sm:$0xff]  }
 0xddc   : > { %v1868_v20 = vpack.c.bf16 %v1864_v14, %v1864_v14 }
 0xdde   : > { %v1920_v15 = vpop.permute.xlu0 %1919 }
 0xddf   : > { %v1925_v17 = vsel %vm1012_vm5, %v1920_v15, 0 }
 0xde0   : > { %2770 = vmatpush3.bf16.msra.mxu1 %v1925_v17  ;;  %v2864_v17 = vld [vmem:[%s3518_s14 + $0x48] sm:$0xff]  }
 0xde1   : > { %v2908_v19 = vpop.eup %2907  ;;  %2781 = vmatprep.subr.bf16.mxu1 %v2940_v16 }
 0xde2   : > { %v1865_v21 = vmul.f32 %v2908_v19, %v2900_v63  ;;  %v2862_v63 = vld [vmem:[%s3516_s12 + $0x18] sm:$0xff]  }
 0xde3   : > { %2772 = vmatmul.mubr.msk.bf16.vlgmr.msra.gmra.mrb[36].mxu1 %vm765_vm3, %v1868_v20  ;;  %v2866_v19 = vld [vmem:[%s3518_s14 + $0x58] sm:$0xff]   ;;  %v2867_v20 = vld [vmem:[%s3518_s14 + $0x60] sm:$0xff]  }
 0xde4   : > { %2782 = vmatpush3.bf16.msra.mxu1 %v2021_v22  ;;  %v1869_v23 = vpack.c.bf16 %v1865_v21, %v1865_v21  ;;  %2783 = vmatprep.mubr.msk.bf16.mxu1 %vm2941_vm2, %v2940_v16  ;;  %v2868_v21 = vld [vmem:[%s3518_s14 + $0x68] sm:$0xff]   ;;  %v2869_v22 = vld [vmem:[%s3518_s14 + $0x70] sm:$0xff]  }
 0xde5   : > { %v2910_v24 = vpop.eup %2909  ;;  %2795 = vmatprep.subr.bf16.mxu1 %v2940_v16 }
 0xde6   : > { %v1866_v25 = vmul.f32 %v2910_v24, %v2902_v2  ;;  %2778 = vmatmul.mubr.msk.bf16.vlgmr.msra.gmra.mrb[36].mxu0 %vm765_vm3, %v1869_v23  ;;  %v2870_v23 = vld [vmem:[%s3518_s14 + $0x78] sm:$0xff]   ;;  %v2535_v24 = vld [vmem:[%s3552_s27 + $0x1] ss:$0 sm:$0xff] }
 0xde7   : > { %2791 = vmatprep.mubr.msk.bf16.mxu0 %vm2941_vm2, %v2940_v16  ;;  %2788 = vmatpush3.bf16.msra.mxu0 %v2859_v32 }
 0xde8   : > { %v1870_v26 = vpack.c.bf16 %v1866_v25, %v1866_v25  ;;  %2789 = vmatprep.subr.bf16.mxu0 %v2940_v16 }
 0xdeb   : > { %2784 = vmatmul.mubr.msk.bf16.vlgmr.msra.gmra.mrb[40].mxu1 %vm765_vm3, %v1870_v26  ;;  %2790 = vmatpush3.bf16.msra.mxu0 %v2860_v33 }
 0xdec   : > { %2799 = vmatprep.mubr.msk.bf16.mxu1 %vm2941_vm2, %v2940_v16  ;;  %2803 = vmatprep.subr.bf16.mxu0 %v2940_v16 }
 0xded   : > { %2796 = vmatpush3.bf16.msra.mxu1 %v2861_v62  ;;  %v2407_v62 = vld [vmem:[%s3556_s17] sm:$0x1] }
 0xdee   : > { %2797 = vmatprep.subr.bf16.mxu1 %v2940_v16 }
 0xdf1   : > { %2798 = vmatpush3.bf16.msra.mxu1 %v2862_v63 }
 0xe48   : > { %v1913_v27 = vpop.f32.mrb[32].mxu0 }
 0xe49   : > { %v2767_v28 = vpop.f32.mrb[33].mxu0 }
 0xe4a   : > { %v1916_v29 = vpop.f32.mrb[34].mxu0 }
 0xe4b   : > { %v2768_v30 = vpop.f32.mrb[35].mxu0 }
 0xeb6   : > { %v1961_v34 = vpop.f32.mrb[36].mxu1 }
 0xeb7   : > { %2064 = vrot.lane.b32.xlu0 %v1961_v34, %s2948_s25  ;;  %v2773_v35 = vpop.f32.mrb[37].mxu1 }
 0xeb8   : > { %v1964_v36 = vpop.f32.mrb[38].mxu1 }
 0xeb9   : > { %v2774_v37 = vpop.f32.mrb[39].mxu1  ;;  %v2009_v38 = vpop.f32.mrb[36].mxu0 }
 0xeba   : > { %2068 = vrot.lane.b32.xlu1 %v2009_v38, %s2949_s26  ;;  %v2779_v40 = vpop.f32.mrb[37].mxu0 }
 0xebb   : > { %v2012_v42 = vpop.f32.mrb[38].mxu0 }
 0xebc   : > { %v2780_v44 = vpop.f32.mrb[39].mxu0  ;;  %v2556_v42 = vld [vmem:[%s3553_s28 + $0x1] ss:$0 sm:$0xff] }
 0xebe   : > { %v2057_v45 = vpop.f32.mrb[40].mxu1 }
 0xebf   : > { %2072 = vrot.lane.b32.xlu0 %v2057_v45, %s2950_s18  ;;  %v2785_v39 = vpop.f32.mrb[41].mxu1 }
 0xec0   : > { %v2060_v47 = vpop.f32.mrb[42].mxu1 }
 0xec1   : > { %v2786_v48 = vpop.f32.mrb[43].mxu1 }
 0xf29   : > { %v2065_v49 = vpop.permute.xlu0 %2064 }
 0xf2a   : > { %v2075_v43 = vsel %vm765_vm3, %v1913_v27, %v2065_v49 }
 0xf2c   : > { %v2069_v50 = vpop.permute.xlu1 %2068 }
 0xf2d   : > { %v2076_v51 = vsel %vm1213_vm6, %v2075_v43, %v2069_v50 }
 0xf31   : > { %v2073_v52 = vpop.permute.xlu0 %2072 }
 0xf32   : > { %v2077_v4 = vsel %vm1215_vm7, %v2076_v51, %v2073_v52 }
 0xf33   : > { %v2078_v31 = vpack.c.bf16 %v2077_v4, %v2077_v4 }
 0xf35   : > { %2792 = vmatmul.mubr.msk.bf16.vlgmr.msra.gmra.mrb[40].mxu0 %vm635_vm1, %v2078_v31 }
 0xf36   : > { %2819 = vmatprep.mubr.msk.bf16.mxu0 %vm2941_vm2, %v2940_v16 }
0x1008   : > { %v2141_v55 = vpop.f32.mrb[40].mxu0 }
0x1009   : > { %v2142_v56 = vadd.f32 %v2522_v53, %v2141_v55  ;;  %v2793_v57 = vpop.f32.mrb[41].mxu0 }
0x100a   : > { %v2144_v58 = vpop.f32.mrb[42].mxu0 }
0x100b   : > { %v2147_v59 = vadd.f32 %v2142_v56, %v3321_v54  ;;  %v2794_v60 = vpop.f32.mrb[43].mxu0  ;;  %v2863_v54 = vld [vmem:[%s3518_s14 + $0x40] sm:$0xff]  }
0x100c   : > { %2804 = vmatpush3.bf16.msra.mxu0 %v2863_v54  ;;  %v2567_v60 = vld [vmem:[%s3554_s13 + $0x1] ss:$0 sm:$0xff] }
0x100d   : > { %v2152_v46 = vsel %vm635_vm1, %v2147_v59, 0.0  ;;  %v2155_v61 = vmul.f32 %v2147_v59, %v2147_v59  ;;  %2805 = vmatprep.subr.bf16.mxu0 %v2940_v16 }
0x100e   : > { %2153 = vadd.xlane.f32.xlu1 %v2152_v46 }
0x100f   : > { %v2156_v41 = vsel %vm635_vm1, %v2155_v61, 0.0  ;;  %v2568_v61 = vld [vmem:[%s3555_s3 + $0x1] ss:$0 sm:$0xff] }
0x1010   : > { %2157 = vadd.xlane.f32.xlu0 %v2156_v41  ;;  %2806 = vmatpush3.bf16.msra.mxu0 %v2864_v17 }
0x1011   : > { %2807 = vmatprep.subr.bf16.mxu0 %v2940_v16 }
0x1014   : > { %2808 = vmatpush3.bf16.msra.mxu0 %v2865_v18 }
0x1015   : > { %2809 = vmatprep.subr.bf16.mxu0 %v2940_v16 }
0x1018   : > { %2810 = vmatpush3.bf16.msra.mxu0 %v2866_v19 }
0x1019   : > { %2811 = vmatprep.subr.bf16.mxu0 %v2940_v16 }
0x101c   : > { %2812 = vmatpush3.bf16.msra.mxu0 %v2867_v20 }
0x101d   : > { %2813 = vmatprep.subr.bf16.mxu0 %v2940_v16 }
0x1020   : > { %2814 = vmatpush3.bf16.msra.mxu0 %v2868_v21 }
0x1021   : > { %2815 = vmatprep.subr.bf16.mxu0 %v2940_v16 }
0x1024   : > { %2816 = vmatpush3.bf16.msra.mxu0 %v2869_v22 }
0x1025   : > { %2817 = vmatprep.subr.bf16.mxu0 %v2940_v16 }
0x1028   : > { %2818 = vmatpush3.bf16.msra.mxu0 %v2870_v23 }
0x109b   : > { %v2154_v1 = vpop.xlane.xlu1 %2153 }
0x109c   : > { %v2159_v2 = vmul.f32 0.03125, %v2154_v1 }
0x109d   : > { %v2158_v5 = vpop.xlane.xlu0 %2157 }
0x109e   : > { %v2161_v6 = vmul.f32 %v2159_v2, %v2159_v2  ;;  %v2160_v7 = vmul.f32 0.03125, %v2158_v5  ;;  %v2163_v10 = vsub.f32 %v2147_v59, %v2159_v2  ;;  %v2412_v2 = vld [vmem:[#allocation5] sm:$0x1] }
0x10a0   : > { %v2162_v8 = vsub.f32 %v2160_v7, %v2161_v6 }
0x10a2   : > { %v2164_v9 = vadd.f32 1e-12, %v2162_v8 }
0x10a4   : > { %2911 = vrsqrt.f32 %v2164_v9 }
0x10ae   : > { %v2912_v11 = vpop.eup %2911 }
0x10af   : > { %v2166_v12 = vmul.f32 %v2912_v11, %v2163_v10 }
0x10b1   : > { %v2173_v13 = vmul.f32 %v2528_v3, %v2166_v12 }
0x10b3   : > { %v2180_v14 = vadd.f32 %v2529_v0, %v2173_v13 }
0x10b5   : > { %v2181_v15 = vpack.c.bf16 %v2180_v14, %v2180_v14 }
0x10b7   : > { %2800 = vmatmul.mubr.msk.bf16.vlgmr.msra.gmra.mrb[44].mxu1 %vm635_vm1, %v2181_v15 }
0x118a   : > { %v2244_v25 = vpop.f32.mrb[44].mxu1 }
0x118b   : > { %v2245_v26 = vadd.f32 %v2535_v24, %v2244_v25  ;;  %v2801_v27 = vpop.f32.mrb[45].mxu1 }
0x118c   : > { %v2247_v28 = vpop.f32.mrb[46].mxu1 }
0x118d   : > { %v2251_v29 = vmul.f32 0.044715, %v2245_v26  ;;  %v2802_v30 = vpop.f32.mrb[47].mxu1  ;;  %v2250_v37 = vmul.f32 0.5, %v2245_v26 }
0x118f   : > { %v2252_v32 = vmul.f32 %v2251_v29, %v2245_v26 }
0x1191   : > { %v2253_v33 = vmul.f32 %v2252_v32, %v2245_v26 }
0x1193   : > { %v2254_v34 = vadd.f32 %v2253_v33, %v2245_v26 }
0x1195   : > { %v2255_v35 = vmul.f32 0.7978846, %v2254_v34 }
0x1197   : > { %2913 = vtanh.f32 %v2255_v35 }
0x11a1   : > { %v2914_v36 = vpop.eup %2913 }
0x11a2   : > { %v2257_v38 = vadd.f32 1.0, %v2914_v36 }
0x11a4   : > { %v2258_v16 = vmul.f32 %v2257_v38, %v2250_v37 }
0x11a6   : > { %v2259_v40 = vpack.c.bf16 %v2258_v16, %v2258_v16 }
0x11a8   : > { %2820 = vmatmul.mubr.bf16.vlgmr.msra.gmra.mrb[44].mxu0 %v2259_v40 }
0x127b   : > { %v2367_v44 = vpop.f32.mrb[44].mxu0 }
0x127c   : > { %v2368_v45 = vadd.f32 %v2556_v42, %v2367_v44  ;;  %v2821_v39 = vpop.f32.mrb[45].mxu0 }
0x127d   : > { %v2370_v47 = vpop.f32.mrb[46].mxu0 }
0x127e   : > { %v2373_v48 = vadd.f32 %v2368_v45, %v2180_v14  ;;  %v2822_v49 = vpop.f32.mrb[47].mxu0 }
0x1280   : > { %v2378_v50 = vsel %vm635_vm1, %v2373_v48, 0.0  ;;  %v2381_v43 = vmul.f32 %v2373_v48, %v2373_v48 }
0x1281   : > { %2379 = vadd.xlane.f32.xlu0 %v2378_v50 }
0x1282   : > { %v2382_v51 = vsel %vm635_vm1, %v2381_v43, 0.0 }
0x1283   : > { %2383 = vadd.xlane.f32.xlu1 %v2382_v51 }
0x130e   : > { %v2380_v52 = vpop.xlane.xlu0 %2379 }
0x130f   : > { %v2385_v4 = vmul.f32 0.03125, %v2380_v52 }
0x1310   : > { %v2384_v31 = vpop.xlane.xlu1 %2383 }
0x1311   : > { %v2387_v53 = vmul.f32 %v2385_v4, %v2385_v4  ;;  %v2386_v55 = vmul.f32 0.03125, %v2384_v31  ;;  %v2389_v58 = vsub.f32 %v2373_v48, %v2385_v4 }
0x1313   : > { %v2388_v56 = vsub.f32 %v2386_v55, %v2387_v53 }
0x1315   : > { %v2390_v57 = vadd.f32 1e-12, %v2388_v56 }
0x1317   : > { %2915 = vrsqrt.f32 %v2390_v57 }
0x1321   : > { %v2916_v59 = vpop.eup %2915 }
0x1322   : > { %v2392_v46 = vmul.f32 %v2916_v59, %v2389_v58 }
0x1324   : > { %v2399_v41 = vmul.f32 %v2567_v60, %v2392_v46 }
0x1326   : > { %v2406_v63 = vadd.f32 %v2568_v61, %v2399_v41 }
0x1328   : > { %v2408_v54 = vmul.f32 %v2407_v62, %v2406_v63 }
0x132a   : > { %v2409_v1 = vsel %vm593_vm0, %v2408_v54, 0.0 }
0x132b   : > { %2410 = vadd.xlane.f32.xlu0 %v2409_v1 }
0x13b8   : > { %v2411_v5 = vpop.xlane.xlu0 %2410 }
0x13b9   : > { %v2413_v6 = vadd.f32 %v2412_v2, %v2411_v5 }
0x13bb   : > { %2415 = vst.msk [vmem:[%s587_s11] sm:$0x1] %vm2414_vm8, %v2413_v6 }
0x13bc PF: > { %s3558_s22 = sld [smem:[#allocation7_spill]] }
0x13c2   : > { %s38_s26 = sadd.s32 1, %s3558_s22  }
0x13c3   : > { %p35_p9 = scmp.ge.s32.totalorder %s38_s26, 4  }
0x13c5   :  { %37 = sbr.rel (!%p35_p9) target bundleno = 25 (0x19), region = 144 }

</bundles_post_ra>
